<compile_context>
chip_gen: v6e
topology: v6e:2x2x1
jax: 0.10.0
libtpu: 0.0.40
codegen_flags: <defaults>
</compile_context>

<pallas_src>
import functools
import math

import jax
import jax.numpy as jnp
from jax.experimental import pallas as pl
from jax.experimental.pallas import tpu as pltpu

EPS = 1e-5


def basic_block_kernel(x_ref, band1_ref, band2_ref, bn_ref, out_ref, *, H, Cp):
    R, L = x_ref.shape            # R = N*H rows, L = W*Cp lanes
    W = L // Cp
    inv_cnt = 1.0 / float(R * W)  # 1 / (N*H*W)

    # Row masks for the vertical conv taps: rows that would cross an image
    # boundary (or wrap) after the sublane roll must contribute zero (H pad).
    h_idx = jax.lax.broadcasted_iota(jnp.int32, (R, L), 0) % H
    not_top = h_idx != 0
    not_bot = h_idx != (H - 1)

    # Channel gather/scatter selectors: lane l holds channel (l % Cp).
    gather = (jax.lax.broadcasted_iota(jnp.int32, (L, Cp), 0) % Cp
              == jax.lax.broadcasted_iota(jnp.int32, (L, Cp), 1)
              ).astype(jnp.float32)                                  # (L, Cp)
    scatter = (jax.lax.broadcasted_iota(jnp.int32, (Cp, L), 1) % Cp
               == jax.lax.broadcasted_iota(jnp.int32, (Cp, L), 0)
               ).astype(jnp.float32)                                 # (Cp, L)

    x = x_ref[...]
    bn = bn_ref[...]                                                 # (4, L)

    def conv3x3(v, band_ref):
        # kh = 0/2 taps: sublane roll (XLU) + boundary mask; kh = 1: in place.
        # kw taps + W zero-padding are folded into the band weights, so each
        # conv is 3 dense MXU matmuls with contraction depth W*Cp.
        up = jnp.where(not_top, pltpu.roll(v, shift=1, axis=0), 0.0)      # row r-1
        dn = jnp.where(not_bot, pltpu.roll(v, shift=R - 1, axis=0), 0.0)  # row r+1
        acc = jnp.dot(up, band_ref[0], preferred_element_type=jnp.float32)
        acc = acc + jnp.dot(v, band_ref[1], preferred_element_type=jnp.float32)
        acc = acc + jnp.dot(dn, band_ref[2], preferred_element_type=jnp.float32)
        return acc

    def batchnorm(y, g_lane, be_lane):
        # Training-mode BN: per-channel batch stats over (N,H,W), biased var.
        # Conv bias is cancelled exactly by the mean subtraction -> folded away.
        colsum = jnp.sum(y, axis=0, keepdims=True)                   # (1, L)
        colsq = jnp.sum(y * y, axis=0, keepdims=True)                # (1, L)
        mean_c = jnp.dot(colsum, gather,
                         preferred_element_type=jnp.float32) * inv_cnt   # (1, Cp)
        ex2_c = jnp.dot(colsq, gather,
                        preferred_element_type=jnp.float32) * inv_cnt    # (1, Cp)
        mean = jnp.dot(mean_c, scatter, preferred_element_type=jnp.float32)  # (1, L)
        ex2 = jnp.dot(ex2_c, scatter, preferred_element_type=jnp.float32)    # (1, L)
        var = ex2 - mean * mean
        scale = g_lane * jax.lax.rsqrt(var + EPS)
        shift = be_lane - mean * scale
        return y * scale + shift

    # conv_block1: conv -> bn -> relu
    r1 = jnp.maximum(batchnorm(conv3x3(x, band1_ref), bn[0:1], bn[1:2]), 0.0)
    # conv_block2: conv -> bn
    z2 = batchnorm(conv3x3(r1, band2_ref), bn[2:3], bn[3:4])
    # residual add + relu (residual is x itself -- no slicing/reshape needed)
    out_ref[...] = jnp.maximum(z2 + x, 0.0)


def basic_block(x_nchw, params):
    """x_nchw: (N, C, H, W) float32.  params: PyTorch-layout weights."""
    w1, b1, g1, be1, w2, b2, g2, be2 = params  # b1/b2 folded away (BN cancels them)
    del b1, b2
    N, C, H, W = x_nchw.shape

    # Pad channels so the packed lane axis W*Cp is a multiple of 128.
    LANE = 128
    unit = LANE // math.gcd(W, LANE)
    Cp = ((C + unit - 1) // unit) * unit
    L = W * Cp
    R = N * H

    # Input relayout: NCHW -> (N*H, W*Cp) lane-dense slab (fused transpose+pad;
    # no spatial padding -- conv boundaries are handled in-kernel).
    x = jnp.transpose(x_nchw, (0, 2, 3, 1)).astype(jnp.float32)
    x = jnp.pad(x, ((0, 0), (0, 0), (0, 0), (0, Cp - C)))
    x2d = x.reshape(R, L)

    # Fold each 3x3 conv into 3 banded (W*Cp, W*Cp) weights (weight-only
    # preprocessing): band[kh][wi*Cp+ci, wo*Cp+co] = wt[co,ci,kh,wi-wo+1].
    def make_band(wt):
        wk = jnp.transpose(wt, (2, 3, 1, 0)).astype(jnp.float32)      # (3,3,Cin,Cout)
        wk = jnp.pad(wk, ((0, 0), (0, 0), (0, Cp - C), (0, Cp - C)))  # (3,3,Cp,Cp)
        bands = []
        for kh in range(3):
            acc = jnp.zeros((L, L), jnp.float32)
            for kw in range(3):
                sm = jnp.eye(W, W, k=1 - kw, dtype=jnp.float32)       # wi = wo + kw - 1
                acc = acc + jnp.einsum('ab,ij->aibj', sm, wk[kh, kw]).reshape(L, L)
            bands.append(acc)
        return jnp.stack(bands)                                       # (3, L, L)

    band1 = make_band(w1)
    band2 = make_band(w2)

    # BN affine params pre-tiled to lane layout, packed into one operand.
    def lane_params(g, be):
        gp = jnp.concatenate([g.astype(jnp.float32), jnp.ones((Cp - C,), jnp.float32)])
        bp = jnp.concatenate([be.astype(jnp.float32), jnp.zeros((Cp - C,), jnp.float32)])
        return jnp.tile(gp, W), jnp.tile(bp, W)

    g1l, be1l = lane_params(g1, be1)
    g2l, be2l = lane_params(g2, be2)
    bn_lanes = jnp.stack([g1l, be1l, g2l, be2l])                      # (4, L)

    kernel = functools.partial(basic_block_kernel, H=H, Cp=Cp)
    out2d = pl.pallas_call(
        kernel,
        out_shape=jax.ShapeDtypeStruct((R, L), jnp.float32),
        grid=(1,),
        in_specs=[pl.BlockSpec((R, L), lambda i: (0, 0)),
                  pl.BlockSpec((3, L, L), lambda i: (0, 0, 0)),
                  pl.BlockSpec((3, L, L), lambda i: (0, 0, 0)),
                  pl.BlockSpec((4, L), lambda i: (0, 0))],
        out_specs=pl.BlockSpec((R, L), lambda i: (0, 0)),
        compiler_params=pltpu.CompilerParams(
            dimension_semantics=("arbitrary",),
            vmem_limit_bytes=32 * 1024 * 1024),
    )(x2d, band1, band2, bn_lanes)

    out = out2d.reshape(N, H, W, Cp)[:, :, :, :C]
    return jnp.transpose(out, (0, 3, 1, 2))                           # back to NCHW


def reference(x, params):
    """Pure-JAX NCHW reference (matches PyTorch training-mode forward)."""
    w1, b1, g1, be1, w2, b2, g2, be2 = params

    def conv(x, w, b):
        y = jax.lax.conv_general_dilated(
            x, w, window_strides=(1, 1), padding=((1, 1), (1, 1)),
            dimension_numbers=('NCHW', 'OIHW', 'NCHW'))
        return y + b[None, :, None, None]

    def bn(x, g, be):
        mean = jnp.mean(x, axis=(0, 2, 3), keepdims=True)
        var = jnp.mean((x - mean) ** 2, axis=(0, 2, 3), keepdims=True)
        return ((x - mean) * jax.lax.rsqrt(var + EPS)
                * g[None, :, None, None] + be[None, :, None, None])

    h = jnp.maximum(bn(conv(x, w1, b1), g1, be1), 0.0)
    h = bn(conv(h, w2, b2), g2, be2)
    return jnp.maximum(h + x, 0.0)


if __name__ == "__main__":
    N, C, H, W = 2, 4, 16, 16
    key = jax.random.PRNGKey(0)
    ks = jax.random.split(key, 5)

    x = jax.random.normal(ks[0], (N, C, H, W), jnp.float32)
    # deterministic synthetic parameters (Conv2d weight/bias; BN gamma=1, beta=0)
    w1 = jax.random.normal(ks[1], (C, C, 3, 3), jnp.float32) * 0.1
    b1 = jax.random.normal(ks[2], (C,), jnp.float32) * 0.1
    w2 = jax.random.normal(ks[3], (C, C, 3, 3), jnp.float32) * 0.1
    b2 = jax.random.normal(ks[4], (C,), jnp.float32) * 0.1
    g1 = jnp.ones((C,), jnp.float32)
    be1 = jnp.zeros((C,), jnp.float32)
    g2 = jnp.ones((C,), jnp.float32)
    be2 = jnp.zeros((C,), jnp.float32)
    params = (w1, b1, g1, be1, w2, b2, g2, be2)

    out = jax.jit(basic_block)(x, params)
    jax.block_until_ready(out)

    ref = reference(x, params)
    assert out.shape == (N, C, H, W)
    assert jnp.allclose(out, ref, atol=1e-3, rtol=1e-3), "mismatch vs JAX reference"

    print("KERNEL_OK")
</pallas_src>

<mosaic_0001>
module attributes {stable_mosaic.version = 11 : i64} {
  func.func @basic_block_kernel(%arg0: i32, %arg1: memref<32x128xf32, #tpu.memory_space<vmem>>, %arg2: memref<3x128x128xf32, #tpu.memory_space<vmem>>, %arg3: memref<3x128x128xf32, #tpu.memory_space<vmem>>, %arg4: memref<4x128xf32, #tpu.memory_space<vmem>>, %arg5: memref<32x128xf32, #tpu.memory_space<vmem>>) attributes {dimension_semantics = [#tpu.dimension_semantics<arbitrary>], iteration_bounds = array<i64: 1>, scalar_prefetch = 0 : i64, scratch_operands = 0 : i64, tpu.core_type = #tpu.core_type<tc>, window_params = [{pipeline_mode = #tpu.pipeline_mode<synchronous>, transform_indices = @transform_0, window_bounds = array<i64: 32, 128>}, {pipeline_mode = #tpu.pipeline_mode<synchronous>, transform_indices = @transform_1, window_bounds = array<i64: 3, 128, 128>}, {pipeline_mode = #tpu.pipeline_mode<synchronous>, transform_indices = @transform_2, window_bounds = array<i64: 3, 128, 128>}, {pipeline_mode = #tpu.pipeline_mode<synchronous>, transform_indices = @transform_3, window_bounds = array<i64: 4, 128>}, {pipeline_mode = #tpu.pipeline_mode<synchronous>, transform_indices = @transform_4, window_bounds = array<i64: 32, 128>}]} {
    %0 = tpu.iota {dimensions = array<i32: 0>} : vector<32x128xi32>
    %c16_i32 = arith.constant 16 : i32
    %c0_i32 = arith.constant 0 : i32
    %1 = arith.cmpi eq, %c16_i32, %c0_i32 : i32
    %c1_i32 = arith.constant 1 : i32
    %2 = arith.select %1, %c1_i32, %c16_i32 : i32
    %3 = vector.broadcast %2 : i32 to vector<32x128xi32>
    %4 = arith.remsi %0, %3 : vector<32x128xi32>
    %c0_i32_0 = arith.constant 0 : i32
    %5 = vector.broadcast %c0_i32_0 : i32 to vector<32x128xi32>
    %6 = arith.cmpi ne, %4, %5 : vector<32x128xi32>
    %c0_i32_1 = arith.constant 0 : i32
    %7 = vector.broadcast %c0_i32_1 : i32 to vector<32x128xi32>
    %8 = arith.cmpi slt, %4, %7 : vector<32x128xi32>
    %c0_i32_2 = arith.constant 0 : i32
    %9 = arith.cmpi slt, %2, %c0_i32_2 : i32
    %10 = vector.broadcast %9 : i1 to vector<32x128xi1>
    %11 = vector.broadcast %10 : vector<32x128xi1> to vector<32x128xi1>
    %12 = arith.xori %8, %11 : vector<32x128xi1>
    %13 = arith.andi %12, %6 : vector<32x128xi1>
    %14 = vector.broadcast %2 : i32 to vector<32x128xi32>
    %15 = arith.addi %4, %14 : vector<32x128xi32>
    %16 = arith.select %13, %15, %4 : vector<32x128xi1>, vector<32x128xi32>
    %c0_i32_3 = arith.constant 0 : i32
    %17 = vector.broadcast %c0_i32_3 : i32 to vector<32x128xi32>
    %18 = arith.cmpi ne, %16, %17 : vector<32x128xi32>
    %c15_i32 = arith.constant 15 : i32
    %19 = vector.broadcast %c15_i32 : i32 to vector<32x128xi32>
    %20 = arith.cmpi ne, %16, %19 : vector<32x128xi32>
    %21 = tpu.iota {dimensions = array<i32: 0>} : vector<128x8xi32>
    %c8_i32 = arith.constant 8 : i32
    %c0_i32_4 = arith.constant 0 : i32
    %22 = arith.cmpi eq, %c8_i32, %c0_i32_4 : i32
    %c1_i32_5 = arith.constant 1 : i32
    %23 = arith.select %22, %c1_i32_5, %c8_i32 : i32
    %24 = vector.broadcast %23 : i32 to vector<128x8xi32>
    %25 = arith.remsi %21, %24 : vector<128x8xi32>
    %c0_i32_6 = arith.constant 0 : i32
    %26 = vector.broadcast %c0_i32_6 : i32 to vector<128x8xi32>
    %27 = arith.cmpi ne, %25, %26 : vector<128x8xi32>
    %c0_i32_7 = arith.constant 0 : i32
    %28 = vector.broadcast %c0_i32_7 : i32 to vector<128x8xi32>
    %29 = arith.cmpi slt, %25, %28 : vector<128x8xi32>
    %c0_i32_8 = arith.constant 0 : i32
    %30 = arith.cmpi slt, %23, %c0_i32_8 : i32
    %31 = vector.broadcast %30 : i1 to vector<128x8xi1>
    %32 = vector.broadcast %31 : vector<128x8xi1> to vector<128x8xi1>
    %33 = arith.xori %29, %32 : vector<128x8xi1>
    %34 = arith.andi %33, %27 : vector<128x8xi1>
    %35 = vector.broadcast %23 : i32 to vector<128x8xi32>
    %36 = arith.addi %25, %35 : vector<128x8xi32>
    %37 = arith.select %34, %36, %25 : vector<128x8xi1>, vector<128x8xi32>
    %38 = tpu.iota {dimensions = array<i32: 1>} : vector<128x8xi32>
    %39 = arith.cmpi eq, %37, %38 : vector<128x8xi32>
    %40 = arith.extui %39 : vector<128x8xi1> to vector<128x8xi32>
    %41 = arith.sitofp %40 : vector<128x8xi32> to vector<128x8xf32>
    %42 = tpu.iota {dimensions = array<i32: 1>} : vector<8x128xi32>
    %c8_i32_9 = arith.constant 8 : i32
    %c0_i32_10 = arith.constant 0 : i32
    %43 = arith.cmpi eq, %c8_i32_9, %c0_i32_10 : i32
    %c1_i32_11 = arith.constant 1 : i32
    %44 = arith.select %43, %c1_i32_11, %c8_i32_9 : i32
    %45 = vector.broadcast %44 : i32 to vector<8x128xi32>
    %46 = arith.remsi %42, %45 : vector<8x128xi32>
    %c0_i32_12 = arith.constant 0 : i32
    %47 = vector.broadcast %c0_i32_12 : i32 to vector<8x128xi32>
    %48 = arith.cmpi ne, %46, %47 : vector<8x128xi32>
    %c0_i32_13 = arith.constant 0 : i32
    %49 = vector.broadcast %c0_i32_13 : i32 to vector<8x128xi32>
    %50 = arith.cmpi slt, %46, %49 : vector<8x128xi32>
    %c0_i32_14 = arith.constant 0 : i32
    %51 = arith.cmpi slt, %44, %c0_i32_14 : i32
    %52 = vector.broadcast %51 : i1 to vector<8x128xi1>
    %53 = vector.broadcast %52 : vector<8x128xi1> to vector<8x128xi1>
    %54 = arith.xori %50, %53 : vector<8x128xi1>
    %55 = arith.andi %54, %48 : vector<8x128xi1>
    %56 = vector.broadcast %44 : i32 to vector<8x128xi32>
    %57 = arith.addi %46, %56 : vector<8x128xi32>
    %58 = arith.select %55, %57, %46 : vector<8x128xi1>, vector<8x128xi32>
    %59 = tpu.iota {dimensions = array<i32: 0>} : vector<8x128xi32>
    %60 = arith.cmpi eq, %58, %59 : vector<8x128xi32>
    %61 = arith.extui %60 : vector<8x128xi1> to vector<8x128xi32>
    %62 = arith.sitofp %61 : vector<8x128xi32> to vector<8x128xf32>
    %c0 = arith.constant 0 : index
    %c0_15 = arith.constant 0 : index
    %63 = vector.load %arg1[%c0, %c0_15] : memref<32x128xf32, #tpu.memory_space<vmem>>, vector<32x128xf32>
    %c0_16 = arith.constant 0 : index
    %c0_17 = arith.constant 0 : index
    %64 = vector.load %arg4[%c0_16, %c0_17] : memref<4x128xf32, #tpu.memory_space<vmem>>, vector<4x128xf32>
    %c1_i32_18 = arith.constant 1 : i32
    %65 = tpu.dynamic_rotate %63 by %c1_i32_18 dim 0 : vector<32x128xf32>, i32 -> vector<32x128xf32>
    %cst = arith.constant 0.000000e+00 : f32
    %66 = vector.broadcast %cst : f32 to vector<32x128xf32>
    %67 = arith.select %18, %65, %66 : vector<32x128xi1>, vector<32x128xf32>
    %c31_i32 = arith.constant 31 : i32
    %68 = tpu.dynamic_rotate %63 by %c31_i32 dim 0 : vector<32x128xf32>, i32 -> vector<32x128xf32>
    %cst_19 = arith.constant 0.000000e+00 : f32
    %69 = vector.broadcast %cst_19 : f32 to vector<32x128xf32>
    %70 = arith.select %20, %68, %69 : vector<32x128xi1>, vector<32x128xf32>
    %c0_20 = arith.constant 0 : index
    %c0_21 = arith.constant 0 : index
    %c0_22 = arith.constant 0 : index
    %71 = vector.load %arg2[%c0_20, %c0_21, %c0_22] : memref<3x128x128xf32, #tpu.memory_space<vmem>>, vector<1x128x128xf32>
    %72 = vector.shape_cast %71 : vector<1x128x128xf32> to vector<128x128xf32>
    %cst_23 = arith.constant dense<0.000000e+00> : vector<32x128xf32>
    %73 = tpu.matmul %67, %72, %cst_23 {dimension_numbers = #tpu.dot_dimension_numbers<[1], [0], [0], [1], [0, 0, 1, 1], [], []>} : vector<32x128xf32>, vector<128x128xf32>, vector<32x128xf32> -> vector<32x128xf32>
    %c1 = arith.constant 1 : index
    %c0_24 = arith.constant 0 : index
    %c0_25 = arith.constant 0 : index
    %74 = vector.load %arg2[%c1, %c0_24, %c0_25] : memref<3x128x128xf32, #tpu.memory_space<vmem>>, vector<1x128x128xf32>
    %75 = vector.shape_cast %74 : vector<1x128x128xf32> to vector<128x128xf32>
    %cst_26 = arith.constant dense<0.000000e+00> : vector<32x128xf32>
    %76 = tpu.matmul %63, %75, %cst_26 {dimension_numbers = #tpu.dot_dimension_numbers<[1], [0], [0], [1], [0, 0, 1, 1], [], []>} : vector<32x128xf32>, vector<128x128xf32>, vector<32x128xf32> -> vector<32x128xf32>
    %77 = arith.addf %73, %76 : vector<32x128xf32>
    %c2 = arith.constant 2 : index
    %c0_27 = arith.constant 0 : index
    %c0_28 = arith.constant 0 : index
    %78 = vector.load %arg2[%c2, %c0_27, %c0_28] : memref<3x128x128xf32, #tpu.memory_space<vmem>>, vector<1x128x128xf32>
    %79 = vector.shape_cast %78 : vector<1x128x128xf32> to vector<128x128xf32>
    %cst_29 = arith.constant dense<0.000000e+00> : vector<32x128xf32>
    %80 = tpu.matmul %70, %79, %cst_29 {dimension_numbers = #tpu.dot_dimension_numbers<[1], [0], [0], [1], [0, 0, 1, 1], [], []>} : vector<32x128xf32>, vector<128x128xf32>, vector<32x128xf32> -> vector<32x128xf32>
    %81 = arith.addf %77, %80 : vector<32x128xf32>
    %82 = vector.extract_strided_slice %64 {offsets = [0, 0], sizes = [1, 128], strides = [1, 1]} : vector<4x128xf32> to vector<1x128xf32>
    %83 = vector.extract_strided_slice %64 {offsets = [1, 0], sizes = [1, 128], strides = [1, 1]} : vector<4x128xf32> to vector<1x128xf32>
    %cst_30 = arith.constant dense<0.000000e+00> : vector<128xf32>
    %84 = vector.multi_reduction <add>, %81, %cst_30 [0] : vector<32x128xf32> to vector<128xf32>
    %85 = vector.shape_cast %84 : vector<128xf32> to vector<1x128xf32>
    %86 = arith.mulf %81, %81 : vector<32x128xf32>
    %cst_31 = arith.constant dense<0.000000e+00> : vector<128xf32>
    %87 = vector.multi_reduction <add>, %86, %cst_31 [0] : vector<32x128xf32> to vector<128xf32>
    %88 = vector.shape_cast %87 : vector<128xf32> to vector<1x128xf32>
    %cst_32 = arith.constant dense<0.000000e+00> : vector<1x8xf32>
    %89 = tpu.matmul %85, %41, %cst_32 {dimension_numbers = #tpu.dot_dimension_numbers<[1], [0], [0], [1], [0, 0, 1, 1], [], []>} : vector<1x128xf32>, vector<128x8xf32>, vector<1x8xf32> -> vector<1x8xf32>
    %cst_33 = arith.constant 0.001953125 : f32
    %90 = vector.broadcast %cst_33 : f32 to vector<1x8xf32>
    %91 = arith.mulf %89, %90 : vector<1x8xf32>
    %cst_34 = arith.constant dense<0.000000e+00> : vector<1x8xf32>
    %92 = tpu.matmul %88, %41, %cst_34 {dimension_numbers = #tpu.dot_dimension_numbers<[1], [0], [0], [1], [0, 0, 1, 1], [], []>} : vector<1x128xf32>, vector<128x8xf32>, vector<1x8xf32> -> vector<1x8xf32>
    %cst_35 = arith.constant 0.001953125 : f32
    %93 = vector.broadcast %cst_35 : f32 to vector<1x8xf32>
    %94 = arith.mulf %92, %93 : vector<1x8xf32>
    %cst_36 = arith.constant dense<0.000000e+00> : vector<1x128xf32>
    %95 = tpu.matmul %91, %62, %cst_36 {dimension_numbers = #tpu.dot_dimension_numbers<[1], [0], [0], [1], [0, 0, 1, 1], [], []>} : vector<1x8xf32>, vector<8x128xf32>, vector<1x128xf32> -> vector<1x128xf32>
    %cst_37 = arith.constant dense<0.000000e+00> : vector<1x128xf32>
    %96 = tpu.matmul %94, %62, %cst_37 {dimension_numbers = #tpu.dot_dimension_numbers<[1], [0], [0], [1], [0, 0, 1, 1], [], []>} : vector<1x8xf32>, vector<8x128xf32>, vector<1x128xf32> -> vector<1x128xf32>
    %97 = arith.mulf %95, %95 : vector<1x128xf32>
    %98 = arith.subf %96, %97 : vector<1x128xf32>
    %cst_38 = arith.constant 9.99999974E-6 : f32
    %99 = vector.broadcast %cst_38 : f32 to vector<1x128xf32>
    %100 = arith.addf %98, %99 : vector<1x128xf32>
    %101 = math.rsqrt %100 : vector<1x128xf32>
    %102 = arith.mulf %82, %101 : vector<1x128xf32>
    %103 = arith.mulf %95, %102 : vector<1x128xf32>
    %104 = arith.subf %83, %103 : vector<1x128xf32>
    %105 = vector.broadcast %102 : vector<1x128xf32> to vector<32x128xf32>
    %106 = arith.mulf %81, %105 : vector<32x128xf32>
    %107 = vector.broadcast %104 : vector<1x128xf32> to vector<32x128xf32>
    %108 = arith.addf %106, %107 : vector<32x128xf32>
    %cst_39 = arith.constant 0.000000e+00 : f32
    %109 = vector.broadcast %cst_39 : f32 to vector<32x128xf32>
    %110 = arith.maximumf %108, %109 : vector<32x128xf32>
    %c1_i32_40 = arith.constant 1 : i32
    %111 = tpu.dynamic_rotate %110 by %c1_i32_40 dim 0 : vector<32x128xf32>, i32 -> vector<32x128xf32>
    %cst_41 = arith.constant 0.000000e+00 : f32
    %112 = vector.broadcast %cst_41 : f32 to vector<32x128xf32>
    %113 = arith.select %18, %111, %112 : vector<32x128xi1>, vector<32x128xf32>
    %c31_i32_42 = arith.constant 31 : i32
    %114 = tpu.dynamic_rotate %110 by %c31_i32_42 dim 0 : vector<32x128xf32>, i32 -> vector<32x128xf32>
    %cst_43 = arith.constant 0.000000e+00 : f32
    %115 = vector.broadcast %cst_43 : f32 to vector<32x128xf32>
    %116 = arith.select %20, %114, %115 : vector<32x128xi1>, vector<32x128xf32>
    %c0_44 = arith.constant 0 : index
    %c0_45 = arith.constant 0 : index
    %c0_46 = arith.constant 0 : index
    %117 = vector.load %arg3[%c0_44, %c0_45, %c0_46] : memref<3x128x128xf32, #tpu.memory_space<vmem>>, vector<1x128x128xf32>
    %118 = vector.shape_cast %117 : vector<1x128x128xf32> to vector<128x128xf32>
    %cst_47 = arith.constant dense<0.000000e+00> : vector<32x128xf32>
    %119 = tpu.matmul %113, %118, %cst_47 {dimension_numbers = #tpu.dot_dimension_numbers<[1], [0], [0], [1], [0, 0, 1, 1], [], []>} : vector<32x128xf32>, vector<128x128xf32>, vector<32x128xf32> -> vector<32x128xf32>
    %c1_48 = arith.constant 1 : index
    %c0_49 = arith.constant 0 : index
    %c0_50 = arith.constant 0 : index
    %120 = vector.load %arg3[%c1_48, %c0_49, %c0_50] : memref<3x128x128xf32, #tpu.memory_space<vmem>>, vector<1x128x128xf32>
    %121 = vector.shape_cast %120 : vector<1x128x128xf32> to vector<128x128xf32>
    %cst_51 = arith.constant dense<0.000000e+00> : vector<32x128xf32>
    %122 = tpu.matmul %110, %121, %cst_51 {dimension_numbers = #tpu.dot_dimension_numbers<[1], [0], [0], [1], [0, 0, 1, 1], [], []>} : vector<32x128xf32>, vector<128x128xf32>, vector<32x128xf32> -> vector<32x128xf32>
    %123 = arith.addf %119, %122 : vector<32x128xf32>
    %c2_52 = arith.constant 2 : index
    %c0_53 = arith.constant 0 : index
    %c0_54 = arith.constant 0 : index
    %124 = vector.load %arg3[%c2_52, %c0_53, %c0_54] : memref<3x128x128xf32, #tpu.memory_space<vmem>>, vector<1x128x128xf32>
    %125 = vector.shape_cast %124 : vector<1x128x128xf32> to vector<128x128xf32>
    %cst_55 = arith.constant dense<0.000000e+00> : vector<32x128xf32>
    %126 = tpu.matmul %116, %125, %cst_55 {dimension_numbers = #tpu.dot_dimension_numbers<[1], [0], [0], [1], [0, 0, 1, 1], [], []>} : vector<32x128xf32>, vector<128x128xf32>, vector<32x128xf32> -> vector<32x128xf32>
    %127 = arith.addf %123, %126 : vector<32x128xf32>
    %128 = vector.extract_strided_slice %64 {offsets = [2, 0], sizes = [1, 128], strides = [1, 1]} : vector<4x128xf32> to vector<1x128xf32>
    %129 = vector.extract_strided_slice %64 {offsets = [3, 0], sizes = [1, 128], strides = [1, 1]} : vector<4x128xf32> to vector<1x128xf32>
    %cst_56 = arith.constant dense<0.000000e+00> : vector<128xf32>
    %130 = vector.multi_reduction <add>, %127, %cst_56 [0] : vector<32x128xf32> to vector<128xf32>
    %131 = vector.shape_cast %130 : vector<128xf32> to vector<1x128xf32>
    %132 = arith.mulf %127, %127 : vector<32x128xf32>
    %cst_57 = arith.constant dense<0.000000e+00> : vector<128xf32>
    %133 = vector.multi_reduction <add>, %132, %cst_57 [0] : vector<32x128xf32> to vector<128xf32>
    %134 = vector.shape_cast %133 : vector<128xf32> to vector<1x128xf32>
    %cst_58 = arith.constant dense<0.000000e+00> : vector<1x8xf32>
    %135 = tpu.matmul %131, %41, %cst_58 {dimension_numbers = #tpu.dot_dimension_numbers<[1], [0], [0], [1], [0, 0, 1, 1], [], []>} : vector<1x128xf32>, vector<128x8xf32>, vector<1x8xf32> -> vector<1x8xf32>
    %cst_59 = arith.constant 0.001953125 : f32
    %136 = vector.broadcast %cst_59 : f32 to vector<1x8xf32>
    %137 = arith.mulf %135, %136 : vector<1x8xf32>
    %cst_60 = arith.constant dense<0.000000e+00> : vector<1x8xf32>
    %138 = tpu.matmul %134, %41, %cst_60 {dimension_numbers = #tpu.dot_dimension_numbers<[1], [0], [0], [1], [0, 0, 1, 1], [], []>} : vector<1x128xf32>, vector<128x8xf32>, vector<1x8xf32> -> vector<1x8xf32>
    %cst_61 = arith.constant 0.001953125 : f32
    %139 = vector.broadcast %cst_61 : f32 to vector<1x8xf32>
    %140 = arith.mulf %138, %139 : vector<1x8xf32>
    %cst_62 = arith.constant dense<0.000000e+00> : vector<1x128xf32>
    %141 = tpu.matmul %137, %62, %cst_62 {dimension_numbers = #tpu.dot_dimension_numbers<[1], [0], [0], [1], [0, 0, 1, 1], [], []>} : vector<1x8xf32>, vector<8x128xf32>, vector<1x128xf32> -> vector<1x128xf32>
    %cst_63 = arith.constant dense<0.000000e+00> : vector<1x128xf32>
    %142 = tpu.matmul %140, %62, %cst_63 {dimension_numbers = #tpu.dot_dimension_numbers<[1], [0], [0], [1], [0, 0, 1, 1], [], []>} : vector<1x8xf32>, vector<8x128xf32>, vector<1x128xf32> -> vector<1x128xf32>
    %143 = arith.mulf %141, %141 : vector<1x128xf32>
    %144 = arith.subf %142, %143 : vector<1x128xf32>
    %cst_64 = arith.constant 9.99999974E-6 : f32
    %145 = vector.broadcast %cst_64 : f32 to vector<1x128xf32>
    %146 = arith.addf %144, %145 : vector<1x128xf32>
    %147 = math.rsqrt %146 : vector<1x128xf32>
    %148 = arith.mulf %128, %147 : vector<1x128xf32>
    %149 = arith.mulf %141, %148 : vector<1x128xf32>
    %150 = arith.subf %129, %149 : vector<1x128xf32>
    %151 = vector.broadcast %148 : vector<1x128xf32> to vector<32x128xf32>
    %152 = arith.mulf %127, %151 : vector<32x128xf32>
    %153 = vector.broadcast %150 : vector<1x128xf32> to vector<32x128xf32>
    %154 = arith.addf %152, %153 : vector<32x128xf32>
    %155 = arith.addf %154, %63 : vector<32x128xf32>
    %cst_65 = arith.constant 0.000000e+00 : f32
    %156 = vector.broadcast %cst_65 : f32 to vector<32x128xf32>
    %157 = arith.maximumf %155, %156 : vector<32x128xf32>
    %c0_66 = arith.constant 0 : index
    %c0_67 = arith.constant 0 : index
    %158 = vector.load %arg5[%c0_66, %c0_67] : memref<32x128xf32, #tpu.memory_space<vmem>>, vector<32x128xf32>
    tpu.vector_store %arg5[%c0_66, %c0_67], %157 {strides = array<i32>} : memref<32x128xf32, #tpu.memory_space<vmem>>, vector<32x128xf32>,
    return
  }
  func.func @transform_0(%arg0: i32) -> (i32, i32) {
    %c0_i32 = arith.constant 0 : i32
    %c0_i32_0 = arith.constant 0 : i32
    %c0_i32_1 = arith.constant 0 : i32
    return %c0_i32, %c0_i32_0 : i32, i32
  }
  func.func @transform_1(%arg0: i32) -> (i32, i32, i32) {
    %c0_i32 = arith.constant 0 : i32
    %c0_i32_0 = arith.constant 0 : i32
    %c0_i32_1 = arith.constant 0 : i32
    %c0_i32_2 = arith.constant 0 : i32
    return %c0_i32, %c0_i32_0, %c0_i32_1 : i32, i32, i32
  }
  func.func @transform_2(%arg0: i32) -> (i32, i32, i32) {
    %c0_i32 = arith.constant 0 : i32
    %c0_i32_0 = arith.constant 0 : i32
    %c0_i32_1 = arith.constant 0 : i32
    %c0_i32_2 = arith.constant 0 : i32
    return %c0_i32, %c0_i32_0, %c0_i32_1 : i32, i32, i32
  }
  func.func @transform_3(%arg0: i32) -> (i32, i32) {
    %c0_i32 = arith.constant 0 : i32
    %c0_i32_0 = arith.constant 0 : i32
    %c0_i32_1 = arith.constant 0 : i32
    return %c0_i32, %c0_i32_0 : i32, i32
  }
  func.func @transform_4(%arg0: i32) -> (i32, i32) {
    %c0_i32 = arith.constant 0 : i32
    %c0_i32_0 = arith.constant 0 : i32
    %c0_i32_1 = arith.constant 0 : i32
    return %c0_i32, %c0_i32_0 : i32, i32
  }
}

</mosaic_0001>

<bundles_post_ra>
// kernel: tile.23
= control target key start
LH: loop header
LB: loop body
LE: loop exit
PB: predicated region body
PF: predicated region fallthrough
CT: control target
= control target key end

     0   :  { %s28_s0 = inlined_call_operand.vmem [shape: f32[8], index: 0, kind: input, shape index: {}]   ;;  %s29_s1 = inlined_call_operand.vmem [shape: f32[16,8], index: 1, kind: output, shape index: {}]  }
   0x1   :  { %v4_v0 = vld [vmem:[%s28_s0] ss:$0 sm:$0xff] }
   0x2   :  { %5 = vst [vmem:[%s29_s1] sm:$0xff] %v4_v0  ;;  %8 = vst [vmem:[%s29_s1 + $0x8] sm:$0xff] %v4_v0 }

// kernel: tile.36
= control target key start
LH: loop header
LB: loop body
LE: loop exit
PB: predicated region body
PF: predicated region fallthrough
CT: control target
= control target key end

     0   :  { %s133_s10 = smov 120   ;;  %s134_s11 = smov 104   ;;  %vm3_vm0 = vcmask 64512   ;;  %vm9_vm1 = vcmask 1048512   ;;  %vm15_vm2 = vcmask 982912   ;;  %vm21_vm3 = vcmask 917312   ;;  %s209_s0 = inlined_call_operand.vmem [shape: f32[16,8], index: 0, kind: input, shape index: {}]   ;;  %s210_s1 = inlined_call_operand.vmem [shape: f32[1,128], index: 1, kind: output, shape index: {}]  }
   0x1   :  { %v103_v0 = vld [vmem:[%s209_s0 + $0xf] sm:$0x1]   ;;  %v105_v1 = vld [vmem:[%s209_s0 + $0xd] sm:$0x1]   ;;  %v104_v2 = vld [vmem:[%s209_s0 + $0xe] sm:$0x1]  }
   0x2   :  { %7 = vrot.lane.b32.xlu0 %v103_v0, %s133_s10  ;;  %19 = vrot.lane.b32.xlu1 %v105_v1, %s134_s11  ;;  %v106_v3 = vld [vmem:[%s209_s0 + $0xc] sm:$0x1]   ;;  %s135_s16 = smov 112   ;;  %s136_s17 = smov 96   ;;  %v107_v4 = vld [vmem:[%s209_s0 + $0xb] sm:$0x1]  }
   0x3   :  { %v108_v5 = vld [vmem:[%s209_s0 + $0xa] sm:$0x1]   ;;  %v2_v6 = vld [vmem:[%s209_s0] sm:$0x1]   ;;  %s137_s24 = smov 88   ;;  %s138_s25 = smov 80  }
   0x4   :  { %4 = vst.msk [vmem:[#allocation0] sm:$0x1] %vm3_vm0, %v2_v6   ;;  %v109_v7 = vld [vmem:[%s209_s0 + $0x9] sm:$0x1]   ;;  %v110_v8 = vld [vmem:[%s209_s0 + $0x8] sm:$0x1]  }
   0x5   :  { %s139_s30 = smov 72   ;;  %s140_s2 = smov 64   ;;  %v111_v9 = vld [vmem:[%s209_s0 + $0x7] sm:$0x1]   ;;  %v112_v10 = vld [vmem:[%s209_s0 + $0x6] sm:$0x1]  }
   0x6   :  { %13 = vrot.lane.b32.xlu0 %v104_v2, %s135_s16  ;;  %25 = vrot.lane.b32.xlu1 %v106_v3, %s136_s17  ;;  %s141_s7 = smov 56   ;;  %s142_s8 = smov 48   ;;  %v113_v11 = vld [vmem:[%s209_s0 + $0x5] sm:$0x1]   ;;  %v114_v12 = vld [vmem:[%s209_s0 + $0x4] sm:$0x1]  }
   0x7   :  { %s143_s13 = smov 40   ;;  %s144_s14 = smov 32   ;;  %v115_v13 = vld [vmem:[%s209_s0 + $0x3] sm:$0x1]   ;;  %v116_v14 = vld [vmem:[%s209_s0 + $0x2] sm:$0x1]  }
   0x8   :  { %s145_s19 = smov 24   ;;  %s146_s20 = smov 16   ;;  %v117_v15 = vld [vmem:[%s209_s0 + $0x1] sm:$0x1]   ;;  %vm27_vm4 = vcmask 851712   ;;  %vm33_vm5 = vcmask 786112  }
   0x9   :  { %s147_s0 = smov 8   ;;  %vm39_vm6 = vcmask 720512   ;;  %vm45_vm7 = vcmask 654912   ;;  %vm51_vm8 = vcmask 589312   ;;  %vm57_vm9 = vcmask 523712  }
   0xa   :  { %31 = vrot.lane.b32.xlu0 %v107_v4, %s137_s24  ;;  %37 = vrot.lane.b32.xlu1 %v108_v5, %s138_s25  ;;  %vm63_vm10 = vcmask 458112   ;;  %vm69_vm11 = vcmask 392512   ;;  %vm75_vm12 = vcmask 326912   ;;  %vm81_vm13 = vcmask 261312  }
   0xb   :  { %vm87_vm14 = vcmask 195712   ;;  %vm93_vm15 = vcmask 130112  }
   0xe   :  { %43 = vrot.lane.b32.xlu0 %v109_v7, %s139_s30  ;;  %49 = vrot.lane.b32.xlu1 %v110_v8, %s140_s2 }
  0x12   :  { %55 = vrot.lane.b32.xlu0 %v111_v9, %s141_s7  ;;  %61 = vrot.lane.b32.xlu1 %v112_v10, %s142_s8 }
  0x16   :  { %67 = vrot.lane.b32.xlu0 %v113_v11, %s143_s13  ;;  %73 = vrot.lane.b32.xlu1 %v114_v12, %s144_s14 }
  0x1a   :  { %79 = vrot.lane.b32.xlu0 %v115_v13, %s145_s19  ;;  %85 = vrot.lane.b32.xlu1 %v116_v14, %s146_s20 }
  0x1e   :  { %91 = vrot.lane.b32.xlu0 %v117_v15, %s147_s0 }
  0x74   :  { %v8_v16 = vpop.permute.xlu0 %7   ;;  %v20_v17 = vpop.permute.xlu1 %19  }
  0x75   :  { %10 = vst.msk [vmem:[#allocation0] sm:$0x1] %vm9_vm1, %v8_v16  }
  0x78   :  { %v14_v18 = vpop.permute.xlu0 %13   ;;  %v26_v19 = vpop.permute.xlu1 %25  }
  0x79   :  { %16 = vst.msk [vmem:[#allocation0] sm:$0x1] %vm15_vm2, %v14_v18  }
  0x7a   :  { %22 = vst.msk [vmem:[#allocation0] sm:$0x1] %vm21_vm3, %v20_v17  }
  0x7b   :  { %28 = vst.msk [vmem:[#allocation0] sm:$0x1] %vm27_vm4, %v26_v19  }
  0x7c   :  { %v32_v20 = vpop.permute.xlu0 %31   ;;  %v38_v21 = vpop.permute.xlu1 %37  }
  0x7d   :  { %34 = vst.msk [vmem:[#allocation0] sm:$0x1] %vm33_vm5, %v32_v20  }
  0x7e   :  { %40 = vst.msk [vmem:[#allocation0] sm:$0x1] %vm39_vm6, %v38_v21  }
  0x80   :  { %v44_v22 = vpop.permute.xlu0 %43   ;;  %v50_v23 = vpop.permute.xlu1 %49  }
  0x81   :  { %46 = vst.msk [vmem:[#allocation0] sm:$0x1] %vm45_vm7, %v44_v22  }
  0x82   :  { %52 = vst.msk [vmem:[#allocation0] sm:$0x1] %vm51_vm8, %v50_v23  }
  0x84   :  { %v56_v24 = vpop.permute.xlu0 %55   ;;  %v62_v25 = vpop.permute.xlu1 %61  }
  0x85   :  { %58 = vst.msk [vmem:[#allocation0] sm:$0x1] %vm57_vm9, %v56_v24  }
  0x86   :  { %64 = vst.msk [vmem:[#allocation0] sm:$0x1] %vm63_vm10, %v62_v25  }
  0x88   :  { %v68_v26 = vpop.permute.xlu0 %67   ;;  %v74_v27 = vpop.permute.xlu1 %73  }
  0x89   :  { %70 = vst.msk [vmem:[#allocation0] sm:$0x1] %vm69_vm11, %v68_v26  }
  0x8a   :  { %76 = vst.msk [vmem:[#allocation0] sm:$0x1] %vm75_vm12, %v74_v27  }
  0x8c   :  { %v80_v28 = vpop.permute.xlu0 %79   ;;  %v86_v29 = vpop.permute.xlu1 %85  }
  0x8d   :  { %82 = vst.msk [vmem:[#allocation0] sm:$0x1] %vm81_vm13, %v80_v28  }
  0x8e   :  { %88 = vst.msk [vmem:[#allocation0] sm:$0x1] %vm87_vm14, %v86_v29  }
  0x90   :  { %v92_v30 = vpop.permute.xlu0 %91  }
  0x91   :  { %94 = vst.msk [vmem:[#allocation0] sm:$0x1] %vm93_vm15, %v92_v30  }
  0x98   :  { %v99_v31 = vld [vmem:[#allocation0] sm:$0x1] }
  0x99   :  { %102 = vst [vmem:[%s210_s1] sm:$0x1] %v99_v31 }

// kernel: basic_block.1
= control target key start
LH: loop header
LB: loop body
LE: loop exit
PB: predicated region body
PF: predicated region fallthrough
CT: control target
= control target key end

     0   :  { %v17_v22 = vlaneseq  ;;  %s3405_s1 = inlined_call_operand.vmem [shape: f32[3,128,128], index: 1, kind: input, shape index: {}]   ;;  %s3406_s0 = inlined_call_operand.vmem [shape: f32[32,128], index: 0, kind: input, shape index: {}]   ;;  %s3407_s2 = inlined_call_operand.vmem [shape: f32[3,128,128], index: 2, kind: input, shape index: {}]   ;;  %s3408_s3 = inlined_call_operand.vmem [shape: f32[4,128], index: 3, kind: input, shape index: {}]   ;;  %s3409_s4 = inlined_call_operand.vmem [shape: f32[32,128], index: 4, kind: output, shape index: {}]  }
   0x1   :  { %v1751_v0 = vld [vmem:[%s3405_s1 + $0xf8] sm:$0xff]  ;;  %v1750_v2 = vld [vmem:[%s3405_s1 + $0xf0] sm:$0xff]  ;;  %v1749_v4 = vld [vmem:[%s3405_s1 + $0xe8] sm:$0xff] }
   0x2   :  { %v393_v1 = vld [vmem:[%s3405_s1 + $0x78] sm:$0xff]  ;;  %2076 = vmatprep.subr.mxu0 %v1751_v0  ;;  %v392_v3 = vld [vmem:[%s3405_s1 + $0x70] sm:$0xff]  ;;  %v391_v5 = vld [vmem:[%s3405_s1 + $0x68] sm:$0xff]  ;;  %v2582_v27 = vshrl.u32 %v17_v22, 7 }
   0x3   :  { %2114 = vmatprep.subr.mxu1 %v393_v1  ;;  %2077 = vmatpush3.msra.mxu0 %v1751_v0  ;;  %v1748_v6 = vld [vmem:[%s3405_s1 + $0xe0] sm:$0xff]  ;;  %v1747_v8 = vld [vmem:[%s3405_s1 + $0xd8] sm:$0xff]  ;;  %v1746_v10 = vld [vmem:[%s3405_s1 + $0xd0] sm:$0xff] }
   0x4   :  { %2115 = vmatpush3.msra.mxu1 %v393_v1  ;;  %2078 = vmatprep.subr.mxu0 %v1750_v2  ;;  %v390_v7 = vld [vmem:[%s3405_s1 + $0x60] sm:$0xff]  ;;  %v389_v9 = vld [vmem:[%s3405_s1 + $0x58] sm:$0xff]  ;;  %v388_v11 = vld [vmem:[%s3405_s1 + $0x50] sm:$0xff]  ;;  %v2606_v33 = vadd.s32 16, %v2582_v27  ;;  %v26_v36 = vand.u32 15, %v2582_v27  ;;  %vm3411_vm0 = vcmp.lt.s32.totalorder %v2582_v27, 1 }
   0x5   :  { %2116 = vmatprep.subr.mxu1 %v392_v3  ;;  %2079 = vmatpush3.msra.mxu0 %v1750_v2  ;;  %v1745_v12 = vld [vmem:[%s3405_s1 + $0xc8] sm:$0xff]  ;;  %v1744_v14 = vld [vmem:[%s3405_s1 + $0xc0] sm:$0xff]  ;;  %v1743_v16 = vld [vmem:[%s3405_s1 + $0xb8] sm:$0xff]  ;;  %vm3410_vm3 = vcmp.lt.s32.totalorder %v2582_v27, 7 }
   0x6   :  { %2117 = vmatpush3.msra.mxu1 %v392_v3  ;;  %2080 = vmatprep.subr.mxu0 %v1749_v4  ;;  %v387_v13 = vld [vmem:[%s3405_s1 + $0x48] sm:$0xff]  ;;  %v386_v15 = vld [vmem:[%s3405_s1 + $0x40] sm:$0xff]  ;;  %v385_v17 = vld [vmem:[%s3405_s1 + $0x38] sm:$0xff]  ;;  %v40_v44 = vand.u32 15, %v2606_v33  ;;  %vm2632_vm1 = vcmp.ne.s32.totalorder %v26_v36, 0  ;;  %v2705_v3 = vadd.s32 8, %v2582_v27 }
   0x7   :  { %2118 = vmatprep.subr.mxu1 %v391_v5  ;;  %2081 = vmatpush3.msra.mxu0 %v1749_v4  ;;  %v1742_v18 = vld [vmem:[%s3405_s1 + $0xb0] sm:$0xff]  ;;  %v1741_v20 = vld [vmem:[%s3405_s1 + $0xa8] sm:$0xff]  ;;  %v1740_v23 = vld [vmem:[%s3405_s1 + $0xa0] sm:$0xff]  ;;  %v84_v36 = vadd.s32 80, %v2582_v27 }
   0x8   :  { %2119 = vmatpush3.msra.mxu1 %v391_v5  ;;  %2082 = vmatprep.subr.mxu0 %v1748_v6  ;;  %v384_v19 = vld [vmem:[%s3405_s1 + $0x30] sm:$0xff]  ;;  %v383_v21 = vld [vmem:[%s3405_s1 + $0x28] sm:$0xff]  ;;  %v382_v24 = vld [vmem:[%s3405_s1 + $0x20] sm:$0xff]  ;;  %vm2646_vm2 = vcmp.ne.s32.totalorder %v40_v44, 0 }
   0x9   :  { %2120 = vmatprep.subr.mxu1 %v390_v7  ;;  %2083 = vmatpush3.msra.mxu0 %v1748_v6  ;;  %v1739_v25 = vld [vmem:[%s3405_s1 + $0x98] sm:$0xff]  ;;  %v2587_v28 = vld [vmem:[%s3406_s0] sm:$0xff]  ;;  %v1738_v30 = vld [vmem:[%s3405_s1 + $0x90] sm:$0xff] }
   0xa   :  { %2121 = vmatpush3.msra.mxu1 %v390_v7  ;;  %2084 = vmatprep.subr.mxu0 %v1747_v8  ;;  %v381_v26 = vld [vmem:[%s3405_s1 + $0x18] sm:$0xff]  ;;  %v380_v31 = vld [vmem:[%s3405_s1 + $0x10] sm:$0xff]  ;;  %v2603_v32 = vld [vmem:[%s3406_s0 + $0x8] sm:$0xff]  ;;  %v352_v37 = vrot.slane %v2587_v28, 7  ;;  %v365_v51 = vrot.slane %v2587_v28, 1  ;;  %v33_v7 = vand.u32 15, %v2705_v3 }
   0xb   :  { %2122 = vmatprep.subr.mxu1 %v389_v9  ;;  %2085 = vmatpush3.msra.mxu0 %v1747_v8  ;;  %v2592_v29 = vld [vmem:[%s3406_s0 + $0x18] sm:$0xff]  ;;  %v1737_v34 = vld [vmem:[%s3405_s1 + $0x88] sm:$0xff]  ;;  %v2620_v39 = vld [vmem:[%s3406_s0 + $0x10] sm:$0xff]  ;;  %v353_v40 = vrot.slane %v2603_v32, 7  ;;  %v366_v52 = vrot.slane %v2603_v32, 1  ;;  %v2716_v8 = vadd.s32 24, %v2582_v27 }
   0xc   :  { %2123 = vmatpush3.msra.mxu1 %v389_v9  ;;  %2086 = vmatprep.subr.mxu0 %v1746_v10  ;;  %v379_v35 = vld [vmem:[%s3405_s1 + $0x8] sm:$0xff]  ;;  %v355_v38 = vrot.slane %v2592_v29, 7  ;;  %v1736_v41 = vld [vmem:[%s3405_s1 + $0x80] sm:$0xff]  ;;  %v354_v43 = vrot.slane %v2620_v39, 7  ;;  %v1769_v48 = vld [vmem:[%s3405_s1 + $0x178] sm:$0xff]  ;;  %v367_v5 = vrot.slane %v2620_v39, 1 }
   0xd   :  { %2124 = vmatprep.subr.mxu1 %v388_v11  ;;  %2087 = vmatpush3.msra.mxu0 %v1746_v10  ;;  %v378_v42 = vld [vmem:[%s3405_s1] sm:$0xff]  ;;  %v359_v47 = vsel %vm3411_vm0, %v352_v37, %v353_v40  ;;  %v1768_v53 = vld [vmem:[%s3405_s1 + $0x170] sm:$0xff]  ;;  %v1767_v55 = vld [vmem:[%s3405_s1 + $0x168] sm:$0xff]  ;;  %v372_v56 = vsel %vm3410_vm3, %v365_v51, %v366_v52  ;;  %v368_v9 = vrot.slane %v2592_v29, 1  ;;  %vm2722_vm4 = vcmp.ne.s32.totalorder %v33_v7, 15 }
   0xe   :  { %2125 = vmatpush3.msra.mxu1 %v388_v11  ;;  %2088 = vmatprep.subr.mxu0 %v1745_v12  ;;  %v360_v46 = vsel %vm3411_vm0, %v355_v38, %v352_v37  ;;  %v358_v50 = vsel %vm3411_vm0, %v353_v40, %v354_v43  ;;  %v357_v54 = vsel %vm3411_vm0, %v354_v43, %v355_v38  ;;  %v1766_v57 = vld [vmem:[%s3405_s1 + $0x160] sm:$0xff]  ;;  %v1765_v58 = vld [vmem:[%s3405_s1 + $0x158] sm:$0xff]  ;;  %v1764_v59 = vld [vmem:[%s3405_s1 + $0x150] sm:$0xff]  ;;  %v3433_v11 = vmov 0 }
   0xf   :  { %2126 = vmatprep.subr.mxu1 %v387_v13  ;;  %2089 = vmatpush3.msra.mxu0 %v1745_v12  ;;  %v1763_v60 = vld [vmem:[%s3405_s1 + $0x148] sm:$0xff]  ;;  %v1762_v61 = vld [vmem:[%s3405_s1 + $0x140] sm:$0xff]  ;;  %v1761_v62 = vld [vmem:[%s3405_s1 + $0x138] sm:$0xff]  ;;  %v3434_v11 = vsel %vm2722_vm4, 4294967295, %v3433_v11  ;;  %v371_v12 = vsel %vm3410_vm3, %v366_v52, %v367_v5  ;;  %v164_v38 = vand.u32 7, %v84_v36 }
  0x10   :  { %2127 = vmatpush3.msra.mxu1 %v387_v13  ;;  %2090 = vmatprep.subr.mxu0 %v1744_v14  ;;  %v1760_v63 = vld [vmem:[%s3405_s1 + $0x130] sm:$0xff]  ;;  %v1759_v0 = vld [vmem:[%s3405_s1 + $0x128] sm:$0xff]  ;;  %v1758_v1 = vld [vmem:[%s3405_s1 + $0x120] sm:$0xff]  ;;  %v47_v13 = vand.u32 15, %v2716_v8 }
  0x11   :  { %2128 = vmatprep.subr.mxu1 %v386_v15  ;;  %2091 = vmatpush3.msra.mxu0 %v1744_v14  ;;  %v1757_v2 = vld [vmem:[%s3405_s1 + $0x118] sm:$0xff]  ;;  %v1756_v4 = vld [vmem:[%s3405_s1 + $0x110] sm:$0xff]  ;;  %v1755_v6 = vld [vmem:[%s3405_s1 + $0x108] sm:$0xff]  ;;  %v370_v14 = vsel %vm3410_vm3, %v367_v5, %v368_v9 }
  0x12   :  { %2129 = vmatpush3.msra.mxu1 %v386_v15  ;;  %2092 = vmatprep.subr.mxu0 %v1743_v16  ;;  %v1754_v10 = vld [vmem:[%s3405_s1 + $0x100] sm:$0xff]  ;;  %vm2735_vm5 = vcmp.ne.s32.totalorder %v47_v13, 15  ;;  %v3435_v15 = vmov 0  ;;  %v1836_v49 = vld [vmem:[%s3407_s2 + $0x150] sm:$0xff] }
  0x13   :  { %2130 = vmatprep.subr.mxu1 %v385_v17  ;;  %2093 = vmatpush3.msra.mxu0 %v1743_v16  ;;  %v3436_v15 = vsel %vm2735_vm5, 4294967295, %v3435_v15  ;;  %v373_v16 = vsel %vm3410_vm3, %v368_v9, %v365_v51 }
  0x14   :  { %2131 = vmatpush3.msra.mxu1 %v385_v17  ;;  %2094 = vmatprep.subr.mxu0 %v1742_v18  ;;  %v2475_v17 = vmov 0.0  }
  0x15   :  { %2132 = vmatprep.subr.mxu1 %v384_v19  ;;  %2095 = vmatpush3.msra.mxu0 %v1742_v18  ;;  %v89_v18 = vadd.s32 120, %v2582_v27 }
  0x16   :  { %2133 = vmatpush3.msra.mxu1 %v384_v19  ;;  %2096 = vmatprep.subr.mxu0 %v1741_v20  ;;  %v2749_v19 = vand.u32 127, %v17_v22 }
  0x17   :  { %2134 = vmatprep.subr.mxu1 %v383_v21  ;;  %2097 = vmatpush3.msra.mxu0 %v1741_v20  ;;  %v199_v20 = vand.u32 7, %v89_v18 }
  0x18   :  { %2135 = vmatpush3.msra.mxu1 %v383_v21  ;;  %2098 = vmatprep.subr.mxu0 %v1740_v23  ;;  %v88_v21 = vadd.s32 112, %v2582_v27  ;;  %vm2822_vm11 = vcmp.eq.s32.totalorder %v164_v38, %v2749_v19 }
  0x19   :  { %2136 = vmatprep.subr.mxu1 %v382_v24  ;;  %2099 = vmatpush3.msra.mxu0 %v1740_v23  ;;  %v87_v23 = vadd.s32 104, %v2582_v27  ;;  %vm2754_vm6 = vcmp.eq.s32.totalorder %v199_v20, %v2749_v19 }
  0x1a   :  { %2137 = vmatpush3.msra.mxu1 %v382_v24  ;;  %2100 = vmatprep.subr.mxu0 %v1739_v25 }
  0x1b   :  { %2138 = vmatprep.subr.mxu1 %v381_v26  ;;  %2101 = vmatpush3.msra.mxu0 %v1739_v25  ;;  %v192_v25 = vand.u32 7, %v88_v21 }
  0x1c   :  { %2139 = vmatpush3.msra.mxu1 %v381_v26  ;;  %2102 = vmatprep.subr.mxu0 %v1738_v30  ;;  %v185_v26 = vand.u32 7, %v87_v23 }
  0x1d   :  { %2140 = vmatprep.subr.mxu1 %v380_v31  ;;  %2103 = vmatpush3.msra.mxu0 %v1738_v30  ;;  %vm2766_vm7 = vcmp.eq.s32.totalorder %v192_v25, %v2749_v19  ;;  %v86_v30 = vadd.s32 96, %v2582_v27 }
  0x1e   :  { %2141 = vmatpush3.msra.mxu1 %v380_v31  ;;  %2104 = vmatprep.subr.mxu0 %v1737_v34  ;;  %vm2772_vm8 = vcmp.eq.s32.totalorder %v185_v26, %v2749_v19 }
  0x1f   :  { %2142 = vmatprep.subr.mxu1 %v379_v35  ;;  %2105 = vmatpush3.msra.mxu0 %v1737_v34  ;;  %v178_v31 = vand.u32 7, %v86_v30 }
  0x20   :  { %2143 = vmatpush3.msra.mxu1 %v379_v35  ;;  %2106 = vmatprep.subr.mxu0 %v1736_v41 }
  0x21   :  { %2144 = vmatprep.subr.mxu1 %v378_v42  ;;  %2107 = vmatpush3.msra.mxu0 %v1736_v41  ;;  %vm2795_vm9 = vcmp.eq.s32.totalorder %v178_v31, %v2749_v19 }
  0x22   :  { %2108 = vmatprep.mubr.f32.mxu0 %v2587_v28  ;;  %2145 = vmatpush3.msra.mxu1 %v378_v42  ;;  %v2476_v28 = vmov 1.0   ;;  %v82_v42 = vadd.s32 64, %v2582_v27 }
  0x23   :  { %2146 = vmatprep.mubr.msk.f32.mxu1 %vm2632_vm1, %v360_v46  ;;  %2109 = vmatmul.mubr.f32.vlgmr.msra.gmra.mxu0 %v2603_v32  ;;  %v85_v32 = vadd.s32 88, %v2582_v27  ;;  %v81_v46 = vadd.s32 56, %v2582_v27 }
  0x24   :  { %2147 = vmatmul.mubr.f32.vlgmr.msra.gmra.mxu1 %v359_v47  ;;  %2152 = vmatprep.subr.mxu0 %v1769_v48  ;;  %v150_v44 = vand.u32 7, %v82_v42 }
  0x25   :  { %2111 = vmatprep.mubr.f32.mxu0 %v2620_v39  ;;  %2153 = vmatpush3.msra.mxu0 %v1769_v48  ;;  %v171_v35 = vand.u32 7, %v85_v32  ;;  %v83_v39 = vadd.s32 72, %v2582_v27  ;;  %v143_v48 = vand.u32 7, %v81_v46 }
  0x26   :  { %2149 = vmatprep.mubr.msk.f32.mxu1 %vm2646_vm2, %v358_v50  ;;  %2154 = vmatprep.subr.mxu0 %v1768_v53  ;;  %vm2850_vm13 = vcmp.eq.s32.totalorder %v150_v44, %v2749_v19  ;;  %v80_v50 = vadd.s32 48, %v2582_v27 }
  0x27   :  { %2155 = vmatpush3.msra.mxu0 %v1768_v53  ;;  %2190 = vmatprep.subr.mxu1 %v2475_v17  ;;  %vm2808_vm10 = vcmp.eq.s32.totalorder %v171_v35, %v2749_v19  ;;  %v157_v41 = vand.u32 7, %v83_v39  ;;  %vm2864_vm14 = vcmp.eq.s32.totalorder %v143_v48, %v2749_v19  ;;  %v79_v53 = vadd.s32 40, %v2582_v27 }
  0x28   :  { %2150 = vmatmul.mubr.f32.gmra.mxu1 %v357_v54  ;;  %2156 = vmatprep.subr.mxu0 %v1767_v55  ;;  %v136_v52 = vand.u32 7, %v80_v50 }
  0x29   :  { %2112 = vmatmul.mubr.f32.gmra.mxu0 %v2592_v29  ;;  %2191 = vmatpush3.msk.msra.mxu1 %vm2754_vm6, %v2476_v28  ;;  %vm2836_vm12 = vcmp.eq.s32.totalorder %v157_v41, %v2749_v19 }
  0x2a   :  { %2157 = vmatpush3.msra.mxu0 %v1767_v55  ;;  %2184 = vmatprep.mubr.f32.mxu0 %v372_v56  ;;  %vm2878_vm15 = vcmp.eq.s32.totalorder %v136_v52, %v2749_v19  ;;  %v129_v55 = vand.u32 7, %v79_v53  ;;  %v78_v56 = vadd.s32 32, %v2582_v27 }
  0x2b   :  { %2158 = vmatprep.subr.mxu0 %v1766_v57  ;;  %2192 = vmatprep.subr.mxu1 %v2475_v17 }
  0x2c   :  { %2159 = vmatpush3.msra.mxu0 %v1766_v57  ;;  %2193 = vmatpush3.msk.msra.mxu1 %vm2766_vm7, %v2476_v28  ;;  %vm2892_vm3 = vcmp.eq.s32.totalorder %v129_v55, %v2749_v19 }
  0x2d   :  { %2160 = vmatprep.subr.mxu0 %v1765_v58  ;;  %2194 = vmatprep.subr.mxu1 %v2475_v17 }
  0x2e   :  { %2161 = vmatpush3.msra.mxu0 %v1765_v58  ;;  %2195 = vmatpush3.msk.msra.mxu1 %vm2772_vm8, %v2476_v28  ;;  %v122_v58 = vand.u32 7, %v78_v56 }
  0x2f   :  { %2162 = vmatprep.subr.mxu0 %v1764_v59  ;;  %2196 = vmatprep.subr.mxu1 %v2475_v17 }
  0x30   :  { %2163 = vmatpush3.msra.mxu0 %v1764_v59  ;;  %2197 = vmatpush3.msk.msra.mxu1 %vm2795_vm9, %v2476_v28  ;;  %vm2905_vm0 = vcmp.eq.s32.totalorder %v122_v58, %v2749_v19  ;;  %v3459_v59 = vmov 0 }
  0x31   :  { %2164 = vmatprep.subr.mxu0 %v1763_v60  ;;  %2198 = vmatprep.subr.mxu1 %v2475_v17  ;;  %v3460_v59 = vsel %vm2905_vm0, 4294967295, %v3459_v59 }
  0x32   :  { %2165 = vmatpush3.msra.mxu0 %v1763_v60  ;;  %2199 = vmatpush3.msk.msra.mxu1 %vm2808_vm10, %v2476_v28  ;;  %v115_v60 = vand.u32 7, %v2716_v8 }
  0x33   :  { %2166 = vmatprep.subr.mxu0 %v1762_v61  ;;  %2200 = vmatprep.subr.mxu1 %v2475_v17 }
  0x34   :  { %2167 = vmatpush3.msra.mxu0 %v1762_v61  ;;  %2201 = vmatpush3.msk.msra.mxu1 %vm2822_vm11, %v2476_v28  ;;  %v3461_v61 = vmov 0 }
  0x35   :  { %2168 = vmatprep.subr.mxu0 %v1761_v62  ;;  %2202 = vmatprep.subr.mxu1 %v2475_v17 }
  0x36   :  { %2169 = vmatpush3.msra.mxu0 %v1761_v62  ;;  %2203 = vmatpush3.msk.msra.mxu1 %vm2836_vm12, %v2476_v28  ;;  %v108_v62 = vand.u32 7, %v2606_v33  ;;  %v3465_v33 = vmov 0 }
  0x37   :  { %2170 = vmatprep.subr.mxu0 %v1760_v63  ;;  %2204 = vmatprep.subr.mxu1 %v2475_v17 }
  0x38   :  { %2171 = vmatpush3.msra.mxu0 %v1760_v63  ;;  %2205 = vmatpush3.msk.msra.mxu1 %vm2850_vm13, %v2476_v28  ;;  %v3463_v63 = vmov 0 }
  0x39   :  { %2172 = vmatprep.subr.mxu0 %v1759_v0  ;;  %2206 = vmatprep.subr.mxu1 %v2475_v17 }
  0x3a   :  { %2173 = vmatpush3.msra.mxu0 %v1759_v0  ;;  %2207 = vmatpush3.msk.msra.mxu1 %vm2864_vm14, %v2476_v28  ;;  %v101_v0 = vand.u32 7, %v2705_v3 }
  0x3b   :  { %2174 = vmatprep.subr.mxu0 %v1758_v1  ;;  %2208 = vmatprep.subr.mxu1 %v2475_v17 }
  0x3c   :  { %2175 = vmatpush3.msra.mxu0 %v1758_v1  ;;  %2209 = vmatpush3.msk.msra.mxu1 %vm2878_vm15, %v2476_v28  ;;  %v94_v1 = vand.u32 7, %v2582_v27 }
  0x3d   :  { %2176 = vmatprep.subr.mxu0 %v1757_v2  ;;  %2210 = vmatprep.subr.mxu1 %v2475_v17 }
  0x3e   :  { %2177 = vmatpush3.msra.mxu0 %v1757_v2  ;;  %2211 = vmatpush3.msk.msra.mxu1 %vm2892_vm3, %v2476_v28  ;;  %v3467_v2 = vmov 0 }
  0x3f   :  { %2178 = vmatprep.subr.mxu0 %v1756_v4  ;;  %2212 = vmatprep.subr.mxu1 %v2475_v17 }
  0x40   :  { %2179 = vmatpush3.msra.mxu0 %v1756_v4  ;;  %2213 = vmatpush3.msk.msra.mxu1 %vm2905_vm0, %v2476_v28 }
  0x41   :  { %2180 = vmatprep.subr.mxu0 %v1755_v6  ;;  %2214 = vmatprep.subr.mxu1 %v2475_v17 }
  0x42   :  { %2181 = vmatpush3.msra.mxu0 %v1755_v6 }
  0x43   :  { %2182 = vmatprep.subr.mxu0 %v1754_v10 }
  0x44   :  { %2183 = vmatpush3.msra.mxu0 %v1754_v10 }
  0x45   :  { %2185 = vmatmul.mubr.msk.f32.vlgmr.msra.gmra.mxu0 %vm2722_vm4, %v371_v12  ;;  %2225 = vmatprep.subr.mxu0 %v2475_v17  ;;  %vm2933_vm4 = vcmp.eq.s32.totalorder %v108_v62, %v2749_v19  ;;  %v336_v62 = vand.u32 7, %v2749_v19 }
  0x46   :  { %2187 = vmatprep.mubr.f32.mxu0 %v370_v14  ;;  %2226 = vmatpush3.msk.msra.mxu0 %vm2754_vm6, %v2476_v28  ;;  %v3464_v63 = vsel %vm2933_vm4, 4294967295, %v3463_v63 }
  0x47   :  { %2227 = vmatprep.subr.mxu0 %v2475_v17 }
  0x48   :  { %2228 = vmatpush3.msk.msra.mxu0 %vm2766_vm7, %v2476_v28 }
  0x49   :  { %2188 = vmatmul.mubr.msk.f32.gmra.mxu0 %vm2735_vm5, %v373_v16  ;;  %2229 = vmatprep.subr.mxu0 %v2475_v17  ;;  %vm2919_vm5 = vcmp.eq.s32.totalorder %v115_v60, %v2749_v19 }
  0x4a   :  { %2230 = vmatpush3.msk.msra.mxu0 %vm2772_vm8, %v2476_v28  ;;  %v3462_v61 = vsel %vm2919_vm5, 4294967295, %v3461_v61  ;;  %2215 = vmatpush3.msk.msra.mxu1 %vm2919_vm5, %v2476_v28 }
  0x4b   :  { %2231 = vmatprep.subr.mxu0 %v2475_v17  ;;  %2216 = vmatprep.subr.mxu1 %v2475_v17 }
  0x4c   :  { %2232 = vmatpush3.msk.msra.mxu0 %vm2795_vm9, %v2476_v28  ;;  %2217 = vmatpush3.msk.msra.mxu1 %vm2933_vm4, %v2476_v28 }
  0x4d   :  { %2233 = vmatprep.subr.mxu0 %v2475_v17  ;;  %2218 = vmatprep.subr.mxu1 %v2475_v17 }
  0x4e   :  { %2234 = vmatpush3.msk.msra.mxu0 %vm2808_vm10, %v2476_v28 }
  0x4f   :  { %2235 = vmatprep.subr.mxu0 %v2475_v17 }
  0x50   :  { %2236 = vmatpush3.msk.msra.mxu0 %vm2822_vm11, %v2476_v28 }
  0x51   :  { %2237 = vmatprep.subr.mxu0 %v2475_v17 }
  0x52   :  { %2238 = vmatpush3.msk.msra.mxu0 %vm2836_vm12, %v2476_v28 }
  0x53   :  { %2239 = vmatprep.subr.mxu0 %v2475_v17 }
  0x54   :  { %2240 = vmatpush3.msk.msra.mxu0 %vm2850_vm13, %v2476_v28 }
  0x55   :  { %2241 = vmatprep.subr.mxu0 %v2475_v17 }
  0x56   :  { %2242 = vmatpush3.msk.msra.mxu0 %vm2864_vm14, %v2476_v28 }
  0x57   :  { %2243 = vmatprep.subr.mxu0 %v2475_v17 }
  0x58   :  { %2244 = vmatpush3.msk.msra.mxu0 %vm2878_vm15, %v2476_v28 }
  0x59   :  { %2245 = vmatprep.subr.mxu0 %v2475_v17 }
  0x5a   :  { %2246 = vmatpush3.msk.msra.mxu0 %vm2892_vm3, %v2476_v28 }
  0x5b   :  { %2247 = vmatprep.subr.mxu0 %v2475_v17 }
  0x5c   :  { %2248 = vmatpush3.msk.msra.mxu0 %vm2905_vm0, %v2476_v28  ;;  %vm3420_vm0 = vmmov 0  }
  0x5d   :  { %2249 = vmatprep.subr.mxu0 %v2475_v17  ;;  %2222 = vmatprep.mubr.msk.f32.mxu1 %vm3420_vm0, %v2475_v17 }
  0x5e   :  { %2250 = vmatpush3.msk.msra.mxu0 %vm2919_vm5, %v2476_v28  ;;  %vm2947_vm5 = vcmp.eq.s32.totalorder %v101_v0, %v2749_v19  ;;  %2257 = vmatprep.mubr.msk.f32.mxu0 %vm3420_vm0, %v2475_v17  ;;  %vm2999_vm0 = vcmp.eq.s32.totalorder %v336_v62, %v2582_v27  ;;  %v1810_v62 = vld [vmem:[%s3407_s2 + $0x90] sm:$0xff] }
  0x5f   :  { %2251 = vmatprep.subr.mxu0 %v2475_v17  ;;  %v3466_v33 = vsel %vm2947_vm5, 4294967295, %v3465_v33  ;;  %2219 = vmatpush3.msk.msra.mxu1 %vm2947_vm5, %v2476_v28 }
  0x60   :  { %2252 = vmatpush3.msk.msra.mxu0 %vm2933_vm4, %v2476_v28  ;;  %2220 = vmatprep.subr.mxu1 %v2475_v17  ;;  %vm2960_vm4 = vcmp.eq.s32.totalorder %v94_v1, %v2749_v19 }
  0x61   :  { %2253 = vmatprep.subr.mxu0 %v2475_v17  ;;  %v3468_v2 = vsel %vm2960_vm4, 4294967295, %v3467_v2  ;;  %2221 = vmatpush3.msk.msra.mxu1 %vm2960_vm4, %v2476_v28 }
  0x62   :  { %2254 = vmatpush3.msk.msra.mxu0 %vm2947_vm5, %v2476_v28  ;;  %2260 = vmatprep.subr.mxu1 %v2475_v17  ;;  %vm3426_vm5 = vcmask 64512  }
  0x63   :  { %2255 = vmatprep.subr.mxu0 %v2475_v17 }
  0x64   :  { %2256 = vmatpush3.msk.msra.mxu0 %vm2960_vm4, %v2476_v28  ;;  %vm3471_vm4 = vmmov 0  }
  0xe3   :  { %v2110_v3 = vpop.f32.mrf.mxu0 }
  0xe4   :  { %v2148_v4 = vpop.f32.mrf.mxu1 }
  0xe5   :  { %v477_v5 = vpop.f32.mrf.mxu0  ;;  %v568_v12 = vadd.f32 %v2148_v4, %v2110_v3 }
  0xe6   :  { %v562_v7 = vpop.f32.mrf.mxu1 }
  0xe7   :  { %v563_v13 = vadd.f32 %v562_v7, %v477_v5  ;;  %v3469_v5 = vmov 0 }
  0xe8   :  { %v2151_v8 = vpop.f32.mrf.mxu1  ;;  %v3470_v5 = vsel %vm2999_vm0, 4294967295, %v3469_v5 }
  0xe9   :  { %v2113_v6 = vpop.f32.mrf.mxu0 }
  0xea   :  { %v572_v14 = vpop.f32.mrf.mxu1  ;;  %v578_v23 = vadd.f32 %v2151_v8, %v2113_v6 }
  0xeb   :  { %v487_v9 = vpop.f32.mrf.mxu0 }
  0xec   :  { %v573_v25 = vadd.f32 %v572_v14, %v487_v9  ;;  %v1822_v14 = vld [vmem:[%s3407_s2 + $0xf0] sm:$0xff] }
 0x105   :  { %v2186_v10 = vpop.f32.mrf.mxu0 }
 0x106   :  { %v2977_v18 = vadd.f32 %v2186_v10, %v568_v12 }
 0x107   :  { %v664_v16 = vpop.f32.mrf.mxu0 }
 0x108   :  { %v2979_v20 = vadd.f32 %v664_v16, %v563_v13  ;;  %v697_v31 = vmul.f32 %v2977_v18, %v2977_v18  ;;  %v1823_v13 = vld [vmem:[%s3407_s2 + $0xf8] sm:$0xff]  ;;  %v1821_v16 = vld [vmem:[%s3407_s2 + $0xe8] sm:$0xff] }
 0x109   :  { %v2189_v21 = vpop.f32.mrf.mxu0 }
 0x10a   :  { %v696_v26 = vmul.f32 %v2979_v20, %v2979_v20  ;;  %v687_v32 = vadd.f32 %v2977_v18, %v2979_v20  ;;  %v2987_v35 = vadd.f32 %v2189_v21, %v578_v23  ;;  %v1067_v21 = vld [vmem:[%s3407_s2 + $0x78] sm:$0xff]  ;;  %v1820_v23 = vld [vmem:[%s3407_s2 + $0xe0] sm:$0xff] }
 0x10b   :  { %v674_v30 = vpop.f32.mrf.mxu0  ;;  %2308 = vmatprep.subr.mxu0 %v1067_v21 }
 0x10c   :  { %v2989_v36 = vadd.f32 %v674_v30, %v573_v25  ;;  %v700_v38 = vadd.f32 %v697_v31, %v696_v26  ;;  %v699_v42 = vmul.f32 %v2987_v35, %v2987_v35  ;;  %v1066_v25 = vld [vmem:[%s3407_s2 + $0x70] sm:$0xff]  ;;  %v1819_v26 = vld [vmem:[%s3407_s2 + $0xd8] sm:$0xff]  ;;  %v1065_v30 = vld [vmem:[%s3407_s2 + $0x68] sm:$0xff] }
 0x10d   :  { %v1818_v31 = vld [vmem:[%s3407_s2 + $0xd0] sm:$0xff] }
 0x10e   :  { %v688_v39 = vadd.f32 %v687_v32, %v2989_v36  ;;  %v698_v41 = vmul.f32 %v2989_v36, %v2989_v36  ;;  %v1064_v32 = vld [vmem:[%s3407_s2 + $0x60] sm:$0xff] }
 0x110   :  { %v689_v44 = vadd.f32 %v688_v39, %v2987_v35  ;;  %v701_v46 = vadd.f32 %v700_v38, %v698_v41  ;;  %v1817_v38 = vld [vmem:[%s3407_s2 + $0xc8] sm:$0xff]  ;;  %v1063_v39 = vld [vmem:[%s3407_s2 + $0x58] sm:$0xff]  ;;  %v1816_v41 = vld [vmem:[%s3407_s2 + $0xc0] sm:$0xff] }
 0x112   :  { %v690_v48 = vrot.slane %v689_v44, 4  ;;  %v702_v50 = vadd.f32 %v701_v46, %v699_v42  ;;  %v1062_v42 = vld [vmem:[%s3407_s2 + $0x50] sm:$0xff]  ;;  %v1061_v46 = vld [vmem:[%s3407_s2 + $0x48] sm:$0xff] }
 0x114   :  { %v691_v52 = vadd.f32 %v690_v48, %v689_v44  ;;  %v703_v53 = vrot.slane %v702_v50, 4  ;;  %v1815_v44 = vld [vmem:[%s3407_s2 + $0xb8] sm:$0xff]  ;;  %v1814_v48 = vld [vmem:[%s3407_s2 + $0xb0] sm:$0xff] }
 0x116   :  { %v692_v55 = vrot.slane %v691_v52, 2  ;;  %v704_v56 = vadd.f32 %v703_v53, %v702_v50  ;;  %v1060_v50 = vld [vmem:[%s3407_s2 + $0x40] sm:$0xff]  ;;  %v1059_v53 = vld [vmem:[%s3407_s2 + $0x38] sm:$0xff] }
 0x118   :  { %v693_v58 = vadd.f32 %v692_v55, %v691_v52  ;;  %v705_v60 = vrot.slane %v704_v56, 2  ;;  %v1813_v52 = vld [vmem:[%s3407_s2 + $0xa8] sm:$0xff]  ;;  %v1812_v55 = vld [vmem:[%s3407_s2 + $0xa0] sm:$0xff] }
 0x11a   :  { %v694_v0 = vrot.slane %v693_v58, 1  ;;  %v706_v1 = vadd.f32 %v705_v60, %v704_v56  ;;  %v1058_v56 = vld [vmem:[%s3407_s2 + $0x30] sm:$0xff]  ;;  %v1057_v60 = vld [vmem:[%s3407_s2 + $0x28] sm:$0xff] }
 0x11c   :  { %v695_v3 = vadd.f32 %v694_v0, %v693_v58  ;;  %v707_v4 = vrot.slane %v706_v1, 1  ;;  %v1811_v58 = vld [vmem:[%s3407_s2 + $0x98] sm:$0xff]  ;;  %v1056_v0 = vld [vmem:[%s3407_s2 + $0x20] sm:$0xff] }
 0x11e   :  { %2223 = vmatmul.mubr.f32.vlgmr.msra.gmra.mxu1 %v695_v3  ;;  %v708_v6 = vadd.f32 %v707_v4, %v706_v1  ;;  %v1809_v1 = vld [vmem:[%s3407_s2 + $0x88] sm:$0xff]  ;;  %v1055_v3 = vld [vmem:[%s3407_s2 + $0x18] sm:$0xff]  ;;  %v1808_v4 = vld [vmem:[%s3407_s2 + $0x80] sm:$0xff] }
 0x11f   :  { %2261 = vmatpush3.msk.msra.mxu1 %vm2999_vm0, %v2476_v28  ;;  %2262 = vmatprep.mubr.msk.f32.mxu1 %vm3471_vm4, %v2475_v17 }
 0x120   :  { %2258 = vmatmul.mubr.f32.vlgmr.msra.gmra.mxu0 %v708_v6  ;;  %2265 = vmatprep.subr.mxu1 %v2475_v17  ;;  %v1054_v6 = vld [vmem:[%s3407_s2 + $0x10] sm:$0xff] }
 0x121   :  { %2309 = vmatpush3.msra.mxu0 %v1067_v21 }
 0x122   :  { %2310 = vmatprep.subr.mxu0 %v1066_v25 }
 0x123   :  { %2311 = vmatpush3.msra.mxu0 %v1066_v25 }
 0x124   :  { %2312 = vmatprep.subr.mxu0 %v1065_v30 }
 0x125   :  { %2313 = vmatpush3.msra.mxu0 %v1065_v30 }
 0x126   :  { %2314 = vmatprep.subr.mxu0 %v1064_v32 }
 0x127   :  { %2315 = vmatpush3.msra.mxu0 %v1064_v32 }
 0x128   :  { %2316 = vmatprep.subr.mxu0 %v1063_v39 }
 0x129   :  { %2317 = vmatpush3.msra.mxu0 %v1063_v39  ;;  %v1018_v39 = vsub.s32 1, %v2582_v27 }
 0x12a   :  { %2318 = vmatprep.subr.mxu0 %v1062_v42 }
 0x12b   :  { %2319 = vmatpush3.msra.mxu0 %v1062_v42 }
 0x12c   :  { %2320 = vmatprep.subr.mxu0 %v1061_v46 }
 0x12d   :  { %2321 = vmatpush3.msra.mxu0 %v1061_v46 }
 0x12e   :  { %2322 = vmatprep.subr.mxu0 %v1060_v50 }
 0x12f   :  { %2323 = vmatpush3.msra.mxu0 %v1060_v50 }
 0x130   :  { %2324 = vmatprep.subr.mxu0 %v1059_v53 }
 0x131   :  { %2325 = vmatpush3.msra.mxu0 %v1059_v53 }
 0x132   :  { %2326 = vmatprep.subr.mxu0 %v1058_v56 }
 0x133   :  { %2327 = vmatpush3.msra.mxu0 %v1058_v56 }
 0x134   :  { %2328 = vmatprep.subr.mxu0 %v1057_v60 }
 0x135   :  { %2329 = vmatpush3.msra.mxu0 %v1057_v60 }
 0x136   :  { %2330 = vmatprep.subr.mxu0 %v1056_v0 }
 0x137   :  { %2331 = vmatpush3.msra.mxu0 %v1056_v0 }
 0x138   :  { %2332 = vmatprep.subr.mxu0 %v1055_v3 }
 0x139   :  { %2333 = vmatpush3.msra.mxu0 %v1055_v3 }
 0x13a   :  { %2334 = vmatprep.subr.mxu0 %v1054_v6 }
 0x13b   :  { %2335 = vmatpush3.msra.mxu0 %v1054_v6  ;;  %v1839_v6 = vld [vmem:[%s3407_s2 + $0x168] sm:$0xff] }
 0x1de   :  { %v775_v19 = vpop.f32.mrf.mxu1 }
 0x1df   :  { %v779_v7 = vmul.f32 0.001953125, %v775_v19  ;;  %v1053_v19 = vld [vmem:[%s3407_s2 + $0x8] sm:$0xff] }
 0x1e0   :  { %v2224_v8 = vpop.f32.mrf.mxu1  ;;  %v846_v9 = vpop.f32.mrf.mxu0  ;;  %2336 = vmatprep.subr.mxu0 %v1053_v19 }
 0x1e1   :  { %2263 = vmatmul.mubr.msk.f32.vlgmr.msra.gmra.mxu1 %vm3426_vm5, %v779_v7  ;;  %v850_v12 = vmul.f32 0.001953125, %v846_v9  ;;  %v1841_v7 = vld [vmem:[%s3407_s2 + $0x178] sm:$0xff]  ;;  %2337 = vmatpush3.msra.mxu0 %v1053_v19  ;;  %v1052_v8 = vld [vmem:[%s3407_s2] sm:$0xff] }
 0x1e2   :  { %2266 = vmatpush3.msk.msra.mxu1 %vm2999_vm0, %v2476_v28  ;;  %v2259_v10 = vpop.f32.mrf.mxu0  ;;  %2267 = vmatprep.mubr.msk.f32.mxu1 %vm3471_vm4, %v2475_v17 }
 0x1e3   :  { %2270 = vmatprep.subr.mxu1 %v1823_v13  ;;  %2338 = vmatprep.subr.mxu0 %v1052_v8 }
 0x1e4   :  { %2339 = vmatpush3.msra.mxu0 %v1052_v8 }
 0x1e5   :  { %2268 = vmatmul.mubr.msk.f32.vlgmr.msra.gmra.mxu1 %vm3426_vm5, %v850_v12  ;;  %2384 = vmatprep.subr.mxu0 %v2475_v17  ;;  %vm3472_vm5 = vcmp.lt.s32.totalorder %v2582_v27, 1 }
 0x1e6   :  { %2271 = vmatpush3.msra.mxu1 %v1823_v13  ;;  %vm3473_vm0 = vmmov %vm3472_vm5 }
 0x1e7   :  { %2272 = vmatprep.subr.mxu1 %v1822_v14 }
 0x1e8   :  { %2273 = vmatpush3.msra.mxu1 %v1822_v14 }
 0x1e9   :  { %2274 = vmatprep.subr.mxu1 %v1821_v16 }
 0x1ea   :  { %2275 = vmatpush3.msra.mxu1 %v1821_v16 }
 0x1eb   :  { %2276 = vmatprep.subr.mxu1 %v1820_v23 }
 0x1ec   :  { %2277 = vmatpush3.msra.mxu1 %v1820_v23  ;;  %v3119_v23 = vld [vmem:[%s3408_s3] sm:$0xf] }
 0x1ed   :  { %2278 = vmatprep.subr.mxu1 %v1819_v26 }
 0x1ee   :  { %2279 = vmatpush3.msra.mxu1 %v1819_v26  ;;  %v1010_v26 = vsub.s32 0, %v2582_v27 }
 0x1ef   :  { %2280 = vmatprep.subr.mxu1 %v1818_v31 }
 0x1f0   :  { %2281 = vmatpush3.msra.mxu1 %v1818_v31 }
 0x1f1   :  { %2282 = vmatprep.subr.mxu1 %v1817_v38 }
 0x1f2   :  { %2283 = vmatpush3.msra.mxu1 %v1817_v38 }
 0x1f3   :  { %2284 = vmatprep.subr.mxu1 %v1816_v41 }
 0x1f4   :  { %2285 = vmatpush3.msra.mxu1 %v1816_v41 }
 0x1f5   :  { %2286 = vmatprep.subr.mxu1 %v1815_v44 }
 0x1f6   :  { %2287 = vmatpush3.msra.mxu1 %v1815_v44 }
 0x1f7   :  { %2288 = vmatprep.subr.mxu1 %v1814_v48 }
 0x1f8   :  { %2289 = vmatpush3.msra.mxu1 %v1814_v48 }
 0x1f9   :  { %2290 = vmatprep.subr.mxu1 %v1813_v52 }
 0x1fa   :  { %2291 = vmatpush3.msra.mxu1 %v1813_v52 }
 0x1fb   :  { %2292 = vmatprep.subr.mxu1 %v1812_v55 }
 0x1fc   :  { %2293 = vmatpush3.msra.mxu1 %v1812_v55 }
 0x1fd   :  { %2294 = vmatprep.subr.mxu1 %v1811_v58 }
 0x1fe   :  { %2295 = vmatpush3.msra.mxu1 %v1811_v58 }
 0x1ff   :  { %2296 = vmatprep.subr.mxu1 %v1810_v62 }
 0x200   :  { %2297 = vmatpush3.msra.mxu1 %v1810_v62 }
 0x201   :  { %2298 = vmatprep.subr.mxu1 %v1809_v1 }
 0x202   :  { %2299 = vmatpush3.msra.mxu1 %v1809_v1 }
 0x203   :  { %2300 = vmatprep.subr.mxu1 %v1808_v4 }
 0x204   :  { %2301 = vmatpush3.msra.mxu1 %v1808_v4 }
 0x205   :  { %2346 = vmatprep.subr.mxu1 %v1841_v7 }
 0x2a1   :  { %v921_v9 = vpop.f32.mrf.mxu1 }
 0x2a2   :  { %v998_v12 = vmul.f32 %v921_v9, %v921_v9 }
 0x2a3   :  { %v2264_v10 = vpop.f32.mrf.mxu1 }
 0x2a4   :  { %v1837_v10 = vld [vmem:[%s3407_s2 + $0x158] sm:$0xff] }
 0x2a5   :  { %v994_v13 = vpop.f32.mrf.mxu1 }
 0x2a6   :  { %v999_v14 = vsub.f32 %v994_v13, %v998_v12  ;;  %v1835_v13 = vld [vmem:[%s3407_s2 + $0x148] sm:$0xff] }
 0x2a7   :  { %v2269_v16 = vpop.f32.mrf.mxu1 }
 0x2a8   :  { %v1000_v21 = vadd.f32 1e-05, %v999_v14  ;;  %v1834_v14 = vld [vmem:[%s3407_s2 + $0x140] sm:$0xff]  ;;  %v1833_v16 = vld [vmem:[%s3407_s2 + $0x138] sm:$0xff] }
 0x2aa   :  { %2467 = vrsqrt.f32 %v1000_v21  ;;  %v1832_v21 = vld [vmem:[%s3407_s2 + $0x130] sm:$0xff] }
 0x2b7   :  { %v2468_v25 = vpop.eup %2467 }
 0x2b8   :  { %v1002_v30 = vmul.f32 %v2468_v25, %v3119_v23  ;;  %v1831_v25 = vld [vmem:[%s3407_s2 + $0x128] sm:$0xff] }
 0x2ba   :  { %v1003_v31 = vmul.f32 %v1002_v30, %v921_v9  ;;  %v1011_v32 = vrot.slane %v1002_v30, %v1010_v26  ;;  %v1830_v26 = vld [vmem:[%s3407_s2 + $0x120] sm:$0xff]  ;;  %v1829_v30 = vld [vmem:[%s3407_s2 + $0x118] sm:$0xff] }
 0x2bc   :  { %v1005_v38 = vrot.slane %v1003_v31, 7  ;;  %v1012_v42 = vmul.f32 %v1011_v32, %v2979_v20  ;;  %v1013_v46 = vmul.f32 %v1011_v32, %v2977_v18  ;;  %v1014_v48 = vmul.f32 %v1011_v32, %v2989_v36  ;;  %v1840_v18 = vld [vmem:[%s3407_s2 + $0x170] sm:$0xff] }
 0x2bd   :  { %v1015_v50 = vmul.f32 %v1011_v32, %v2987_v35  ;;  %v1828_v31 = vld [vmem:[%s3407_s2 + $0x110] sm:$0xff]  ;;  %v1827_v32 = vld [vmem:[%s3407_s2 + $0x108] sm:$0xff] }
 0x2be   :  { %v1007_v41 = vsub.f32 %v3119_v23, %v1005_v38 }
 0x2c0   :  { %v1019_v44 = vrot.slane %v1007_v41, %v1018_v39  ;;  %v1826_v39 = vld [vmem:[%s3407_s2 + $0x100] sm:$0xff] }
 0x2c2   :  { %v1020_v52 = vadd.f32 %v1019_v44, %v1012_v42  ;;  %v1021_v53 = vadd.f32 %v1019_v44, %v1013_v46  ;;  %v1022_v55 = vadd.f32 %v1019_v44, %v1014_v48  ;;  %v1023_v56 = vadd.f32 %v1019_v44, %v1015_v50 }
 0x2c4   :  { %v3129_v58 = vmax.f32 %v1020_v52, 0.0  ;;  %v3131_v60 = vmax.f32 %v1021_v53, 0.0  ;;  %v3133_v62 = vmax.f32 %v1022_v55, 0.0  ;;  %v3135_v0 = vmax.f32 %v1023_v56, 0.0 }
 0x2c6   :  { %2302 = vmatprep.mubr.f32.mxu1 %v3129_v58  ;;  %v1028_v20 = vrot.slane %v3129_v58, 7  ;;  %v1031_v35 = vrot.slane %v3135_v0, 7  ;;  %v1029_v36 = vrot.slane %v3131_v60, 7  ;;  %v1030_v1 = vrot.slane %v3133_v62, 7 }
 0x2c7   :  { %2303 = vmatmul.mubr.f32.vlgmr.msra.gmra.mxu1 %v3131_v60  ;;  %v1040_v19 = vrot.slane %v3129_v58, 1  ;;  %v1041_v8 = vrot.slane %v3131_v60, 1  ;;  %v1042_v38 = vrot.slane %v3133_v62, 1  ;;  %v1043_v41 = vrot.slane %v3135_v0, 1 }
 0x2c8   :  { %2347 = vmatpush3.msra.mxu1 %v1841_v7  ;;  %2305 = vmatprep.mubr.f32.mxu1 %v3133_v62  ;;  %v1035_v3 = vsel %vm3472_vm5, %v1031_v35, %v1028_v20  ;;  %v1034_v4 = vsel %vm3473_vm0, %v1028_v20, %v1029_v36  ;;  %v1838_v7 = vld [vmem:[%s3407_s2 + $0x160] sm:$0xff]  ;;  %v1033_v9 = vsel %vm3473_vm0, %v1029_v36, %v1030_v1  ;;  %vm3475_vm5 = vmmov %vm3473_vm0 }
 0x2c9   :  { %2348 = vmatprep.subr.mxu1 %v1840_v18  ;;  %2340 = vmatprep.mubr.msk.f32.mxu0 %vm2632_vm1, %v1035_v3  ;;  %vm3474_vm1 = vcmp.lt.s32.totalorder %v2582_v27, 7  ;;  %v1032_v12 = vsel %vm3475_vm5, %v1030_v1, %v1031_v35 }
 0x2ca   :  { %2349 = vmatpush3.msra.mxu1 %v1840_v18  ;;  %2341 = vmatmul.mubr.f32.vlgmr.msra.gmra.mxu0 %v1034_v4  ;;  %v1046_v45 = vsel %vm3474_vm1, %v1040_v19, %v1041_v8  ;;  %vm3477_vm0 = vmmov %vm3474_vm1  ;;  %vm3478_vm1 = vnez %v3434_v11 }
 0x2cb   :  { %2350 = vmatprep.subr.mxu1 %v1839_v6  ;;  %2306 = vmatmul.mubr.f32.gmra.mxu1 %v3135_v0  ;;  %v1045_v42 = vsel %vm3477_vm0, %v1041_v8, %v1042_v38  ;;  %vm3479_vm5 = vmmov %vm3477_vm0  ;;  %vm3480_vm0 = vnez %v3462_v61 }
 0x2cc   :  { %2343 = vmatprep.mubr.msk.f32.mxu0 %vm2646_vm2, %v1033_v9  ;;  %2351 = vmatpush3.msra.mxu1 %v1839_v6  ;;  %vm3476_vm2 = vnez %v3460_v59  ;;  %v1044_v44 = vsel %vm3479_vm5, %v1042_v38, %v1043_v41 }
 0x2cd   :  { %2352 = vmatprep.subr.mxu1 %v1838_v7  ;;  %2378 = vmatprep.mubr.f32.mxu1 %v1046_v45 }
 0x2ce   :  { %2353 = vmatpush3.msra.mxu1 %v1838_v7  ;;  %2344 = vmatmul.mubr.f32.gmra.mxu0 %v1032_v12 }
 0x2cf   :  { %2354 = vmatprep.subr.mxu1 %v1837_v10  ;;  %2385 = vmatpush3.msk.msra.mxu0 %vm2754_vm6, %v2476_v28 }
 0x2d0   :  { %2355 = vmatpush3.msra.mxu1 %v1837_v10  ;;  %2386 = vmatprep.subr.mxu0 %v2475_v17 }
 0x2d1   :  { %2356 = vmatprep.subr.mxu1 %v1836_v49  ;;  %2387 = vmatpush3.msk.msra.mxu0 %vm2766_vm7, %v2476_v28 }
 0x2d2   :  { %2357 = vmatpush3.msra.mxu1 %v1836_v49  ;;  %2388 = vmatprep.subr.mxu0 %v2475_v17 }
 0x2d3   :  { %2358 = vmatprep.subr.mxu1 %v1835_v13  ;;  %2389 = vmatpush3.msk.msra.mxu0 %vm2772_vm8, %v2476_v28 }
 0x2d4   :  { %2359 = vmatpush3.msra.mxu1 %v1835_v13  ;;  %2390 = vmatprep.subr.mxu0 %v2475_v17 }
 0x2d5   :  { %2360 = vmatprep.subr.mxu1 %v1834_v14  ;;  %2391 = vmatpush3.msk.msra.mxu0 %vm2795_vm9, %v2476_v28 }
 0x2d6   :  { %2361 = vmatpush3.msra.mxu1 %v1834_v14  ;;  %2392 = vmatprep.subr.mxu0 %v2475_v17 }
 0x2d7   :  { %2362 = vmatprep.subr.mxu1 %v1833_v16  ;;  %2393 = vmatpush3.msk.msra.mxu0 %vm2808_vm10, %v2476_v28 }
 0x2d8   :  { %2363 = vmatpush3.msra.mxu1 %v1833_v16  ;;  %2394 = vmatprep.subr.mxu0 %v2475_v17 }
 0x2d9   :  { %2364 = vmatprep.subr.mxu1 %v1832_v21  ;;  %2395 = vmatpush3.msk.msra.mxu0 %vm2822_vm11, %v2476_v28 }
 0x2da   :  { %2365 = vmatpush3.msra.mxu1 %v1832_v21  ;;  %2396 = vmatprep.subr.mxu0 %v2475_v17 }
 0x2db   :  { %2366 = vmatprep.subr.mxu1 %v1831_v25  ;;  %2397 = vmatpush3.msk.msra.mxu0 %vm2836_vm12, %v2476_v28 }
 0x2dc   :  { %2367 = vmatpush3.msra.mxu1 %v1831_v25  ;;  %2398 = vmatprep.subr.mxu0 %v2475_v17 }
 0x2dd   :  { %2368 = vmatprep.subr.mxu1 %v1830_v26  ;;  %2399 = vmatpush3.msk.msra.mxu0 %vm2850_vm13, %v2476_v28 }
 0x2de   :  { %2369 = vmatpush3.msra.mxu1 %v1830_v26  ;;  %2400 = vmatprep.subr.mxu0 %v2475_v17 }
 0x2df   :  { %2370 = vmatprep.subr.mxu1 %v1829_v30  ;;  %2401 = vmatpush3.msk.msra.mxu0 %vm2864_vm14, %v2476_v28 }
 0x2e0   :  { %2371 = vmatpush3.msra.mxu1 %v1829_v30  ;;  %2402 = vmatprep.subr.mxu0 %v2475_v17 }
 0x2e1   :  { %2372 = vmatprep.subr.mxu1 %v1828_v31  ;;  %2403 = vmatpush3.msk.msra.mxu0 %vm2878_vm15, %v2476_v28 }
 0x2e2   :  { %2373 = vmatpush3.msra.mxu1 %v1828_v31  ;;  %2404 = vmatprep.subr.mxu0 %v2475_v17 }
 0x2e3   :  { %2374 = vmatprep.subr.mxu1 %v1827_v32  ;;  %2405 = vmatpush3.msk.msra.mxu0 %vm2892_vm3, %v2476_v28 }
 0x2e4   :  { %2375 = vmatpush3.msra.mxu1 %v1827_v32  ;;  %2406 = vmatprep.subr.mxu0 %v2475_v17 }
 0x2e5   :  { %2376 = vmatprep.subr.mxu1 %v1826_v39  ;;  %2407 = vmatpush3.msk.msra.mxu0 %vm3476_vm2, %v2476_v28 }
 0x2e6   :  { %2377 = vmatpush3.msra.mxu1 %v1826_v39  ;;  %2408 = vmatprep.subr.mxu0 %v2475_v17 }
 0x2e7   :  { %2379 = vmatmul.mubr.msk.f32.vlgmr.msra.gmra.mxu1 %vm3478_vm1, %v1045_v42  ;;  %2419 = vmatprep.subr.mxu1 %v2475_v17  ;;  %vm3481_vm1 = vmmov %vm3479_vm5  ;;  %vm3482_vm5 = vnez %v3436_v15 }
 0x2e8   :  { %2381 = vmatprep.mubr.f32.mxu1 %v1044_v44  ;;  %2420 = vmatpush3.msk.msra.mxu1 %vm2754_vm6, %v2476_v28  ;;  %v1047_v11 = vsel %vm3481_vm1, %v1043_v41, %v1040_v19  ;;  %vm3483_vm6 = vnez %v3464_v63 }
 0x2e9   :  { %2421 = vmatprep.subr.mxu1 %v2475_v17  ;;  %2409 = vmatpush3.msk.msra.mxu0 %vm3480_vm0, %v2476_v28 }
 0x2ea   :  { %2422 = vmatpush3.msk.msra.mxu1 %vm2766_vm7, %v2476_v28  ;;  %2410 = vmatprep.subr.mxu0 %v2475_v17  ;;  %vm3484_vm7 = vnez %v3466_v33 }
 0x2eb   :  { %2382 = vmatmul.mubr.msk.f32.gmra.mxu1 %vm3482_vm5, %v1047_v11  ;;  %2423 = vmatprep.subr.mxu1 %v2475_v17 }
 0x2ec   :  { %2424 = vmatpush3.msk.msra.mxu1 %vm2772_vm8, %v2476_v28  ;;  %2411 = vmatpush3.msk.msra.mxu0 %vm3483_vm6, %v2476_v28  ;;  %vm3485_vm8 = vnez %v3468_v2 }
 0x2ed   :  { %2425 = vmatprep.subr.mxu1 %v2475_v17  ;;  %2412 = vmatprep.subr.mxu0 %v2475_v17 }
 0x2ee   :  { %2426 = vmatpush3.msk.msra.mxu1 %vm2795_vm9, %v2476_v28  ;;  %2413 = vmatpush3.msk.msra.mxu0 %vm3484_vm7, %v2476_v28  ;;  %vm3487_vm9 = vcmask 64512  }
 0x2ef   :  { %2427 = vmatprep.subr.mxu1 %v2475_v17  ;;  %2414 = vmatprep.subr.mxu0 %v2475_v17 }
 0x2f0   :  { %2428 = vmatpush3.msk.msra.mxu1 %vm2808_vm10, %v2476_v28  ;;  %2415 = vmatpush3.msk.msra.mxu0 %vm3485_vm8, %v2476_v28  ;;  %vm3488_vm10 = vmmov %vm3487_vm9 }
 0x2f1   :  { %2429 = vmatprep.subr.mxu1 %v2475_v17  ;;  %2416 = vmatprep.mubr.msk.f32.mxu0 %vm3471_vm4, %v2475_v17 }
 0x2f2   :  { %2430 = vmatpush3.msk.msra.mxu1 %vm2822_vm11, %v2476_v28  ;;  %2451 = vmatprep.mubr.msk.f32.mxu1 %vm3471_vm4, %v2475_v17 }
 0x2f3   :  { %2431 = vmatprep.subr.mxu1 %v2475_v17  ;;  %2454 = vmatprep.subr.mxu0 %v2475_v17 }
 0x2f4   :  { %2432 = vmatpush3.msk.msra.mxu1 %vm2836_vm12, %v2476_v28 }
 0x2f5   :  { %2433 = vmatprep.subr.mxu1 %v2475_v17 }
 0x2f6   :  { %2434 = vmatpush3.msk.msra.mxu1 %vm2850_vm13, %v2476_v28 }
 0x2f7   :  { %2435 = vmatprep.subr.mxu1 %v2475_v17 }
 0x2f8   :  { %2436 = vmatpush3.msk.msra.mxu1 %vm2864_vm14, %v2476_v28 }
 0x2f9   :  { %2437 = vmatprep.subr.mxu1 %v2475_v17 }
 0x2fa   :  { %2438 = vmatpush3.msk.msra.mxu1 %vm2878_vm15, %v2476_v28 }
 0x2fb   :  { %2439 = vmatprep.subr.mxu1 %v2475_v17 }
 0x2fc   :  { %2440 = vmatpush3.msk.msra.mxu1 %vm2892_vm3, %v2476_v28  ;;  %vm3486_vm3 = vnez %v3470_v5 }
 0x2fd   :  { %2441 = vmatprep.subr.mxu1 %v2475_v17 }
 0x2fe   :  { %2442 = vmatpush3.msk.msra.mxu1 %vm3476_vm2, %v2476_v28 }
 0x2ff   :  { %2443 = vmatprep.subr.mxu1 %v2475_v17 }
 0x300   :  { %2444 = vmatpush3.msk.msra.mxu1 %vm3480_vm0, %v2476_v28 }
 0x301   :  { %2445 = vmatprep.subr.mxu1 %v2475_v17 }
 0x302   :  { %2446 = vmatpush3.msk.msra.mxu1 %vm3483_vm6, %v2476_v28 }
 0x303   :  { %2447 = vmatprep.subr.mxu1 %v2475_v17 }
 0x304   :  { %2448 = vmatpush3.msk.msra.mxu1 %vm3484_vm7, %v2476_v28 }
 0x305   :  { %2449 = vmatprep.subr.mxu1 %v2475_v17 }
 0x306   :  { %2450 = vmatpush3.msk.msra.mxu1 %vm3485_vm8, %v2476_v28 }
 0x387   :  { %v2304_v15 = vpop.f32.mrf.mxu1 }
 0x389   :  { %v1151_v24 = vpop.f32.mrf.mxu1 }
 0x38a   :  { %v2342_v22 = vpop.f32.mrf.mxu0 }
 0x38b   :  { %v2307_v29 = vpop.f32.mrf.mxu1  ;;  %v1242_v47 = vadd.f32 %v2342_v22, %v2304_v15 }
 0x38c   :  { %v1236_v34 = vpop.f32.mrf.mxu0 }
 0x38d   :  { %v1161_v37 = vpop.f32.mrf.mxu1  ;;  %v1237_v51 = vadd.f32 %v1236_v34, %v1151_v24  ;;  %v1697_v24 = vsub.s32 3, %v2582_v27 }
 0x38e   :  { %v2345_v40 = vpop.f32.mrf.mxu0 }
 0x38f   :  { %v1252_v33 = vadd.f32 %v2345_v40, %v2307_v29 }
 0x390   :  { %v1246_v54 = vpop.f32.mrf.mxu0 }
 0x391   :  { %v1247_v46 = vadd.f32 %v1246_v54, %v1161_v37 }
 0x3a7   :  { %v2380_v43 = vpop.f32.mrf.mxu1 }
 0x3a8   :  { %v3358_v59 = vadd.f32 %v2380_v43, %v1242_v47 }
 0x3a9   :  { %v1338_v57 = vpop.f32.mrf.mxu1 }
 0x3aa   :  { %v1357_v61 = vadd.f32 %v1338_v57, %v1237_v51  ;;  %v1371_v50 = vmul.f32 %v3358_v59, %v3358_v59 }
 0x3ab   :  { %v2383_v63 = vpop.f32.mrf.mxu1 }
 0x3ac   :  { %v1370_v2 = vmul.f32 %v1357_v61, %v1357_v61  ;;  %v1361_v52 = vadd.f32 %v3358_v59, %v1357_v61  ;;  %v1360_v53 = vadd.f32 %v2383_v63, %v1252_v33  ;;  %v2471_v63 = vld [vmem:[%s3406_s0] sm:$0xff] }
 0x3ad   :  { %v1348_v48 = vpop.f32.mrf.mxu1 }
 0x3ae   :  { %v1359_v55 = vadd.f32 %v1348_v48, %v1247_v46  ;;  %v1374_v56 = vadd.f32 %v1371_v50, %v1370_v2  ;;  %v1373_v62 = vmul.f32 %v1360_v53, %v1360_v53  ;;  %v2474_v46 = vld [vmem:[%s3406_s0 + $0x18] sm:$0xff] }
 0x3b0   :  { %v1362_v58 = vadd.f32 %v1361_v52, %v1359_v55  ;;  %v1372_v60 = vmul.f32 %v1359_v55, %v1359_v55 }
 0x3b2   :  { %v1363_v0 = vadd.f32 %v1362_v58, %v1360_v53  ;;  %v1375_v18 = vadd.f32 %v1374_v56, %v1372_v60 }
 0x3b4   :  { %v1364_v20 = vrot.slane %v1363_v0, 4  ;;  %v1376_v35 = vadd.f32 %v1375_v18, %v1373_v62 }
 0x3b6   :  { %v1365_v36 = vadd.f32 %v1364_v20, %v1363_v0  ;;  %v1377_v1 = vrot.slane %v1376_v35, 4 }
 0x3b8   :  { %v1366_v3 = vrot.slane %v1365_v36, 2  ;;  %v1378_v4 = vadd.f32 %v1377_v1, %v1376_v35 }
 0x3ba   :  { %v1367_v6 = vadd.f32 %v1366_v3, %v1365_v36  ;;  %v1379_v19 = vrot.slane %v1378_v4, 2 }
 0x3bc   :  { %v1368_v8 = vrot.slane %v1367_v6, 1  ;;  %v1380_v7 = vadd.f32 %v1379_v19, %v1378_v4 }
 0x3be   :  { %v1369_v9 = vadd.f32 %v1368_v8, %v1367_v6  ;;  %v1381_v45 = vrot.slane %v1380_v7, 1 }
 0x3c0   :  { %2417 = vmatmul.mubr.f32.vlgmr.msra.gmra.mxu0 %v1369_v9  ;;  %v1382_v10 = vadd.f32 %v1381_v45, %v1380_v7 }
 0x3c1   :  { %2455 = vmatpush3.msk.msra.mxu0 %vm3486_vm3, %v2476_v28  ;;  %2456 = vmatprep.mubr.msk.f32.mxu0 %vm3471_vm4, %v2475_v17 }
 0x3c2   :  { %2452 = vmatmul.mubr.f32.vlgmr.msra.gmra.mxu1 %v1382_v10  ;;  %2459 = vmatprep.subr.mxu0 %v2475_v17 }
 0x480   :  { %v1449_v12 = vpop.f32.mrf.mxu0 }
 0x481   :  { %v1453_v49 = vmul.f32 0.001953125, %v1449_v12 }
 0x482   :  { %v2418_v13 = vpop.f32.mrf.mxu0  ;;  %v1520_v14 = vpop.f32.mrf.mxu1 }
 0x483   :  { %2457 = vmatmul.mubr.msk.f32.vlgmr.msra.gmra.mxu0 %vm3487_vm9, %v1453_v49  ;;  %v1524_v21 = vmul.f32 0.001953125, %v1520_v14 }
 0x484   :  { %2460 = vmatpush3.msk.msra.mxu0 %vm3486_vm3, %v2476_v28  ;;  %v2453_v16 = vpop.f32.mrf.mxu1  ;;  %2461 = vmatprep.mubr.msk.f32.mxu0 %vm3471_vm4, %v2475_v17  ;;  %v1689_v28 = vsub.s32 2, %v2582_v27  ;;  %v2472_v27 = vld [vmem:[%s3406_s0 + $0x8] sm:$0xff] }
 0x487   :  { %2462 = vmatmul.mubr.msk.f32.vlgmr.msra.gmra.mxu0 %vm3488_vm10, %v1524_v21 }
 0x543   :  { %v1594_v25 = vpop.f32.mrf.mxu0 }
 0x544   :  { %v1671_v30 = vmul.f32 %v1594_v25, %v1594_v25 }
 0x545   :  { %v2458_v26 = vpop.f32.mrf.mxu0 }
 0x547   :  { %v1667_v31 = vpop.f32.mrf.mxu0 }
 0x548   :  { %v1672_v32 = vsub.f32 %v1667_v31, %v1671_v30 }
 0x549   :  { %v2463_v38 = vpop.f32.mrf.mxu0 }
 0x54a   :  { %v1673_v39 = vadd.f32 1e-05, %v1672_v32 }
 0x54c   :  { %2469 = vrsqrt.f32 %v1673_v39 }
 0x559   :  { %v2470_v41 = vpop.eup %2469 }
 0x55a   :  { %v1676_v42 = vrot.slane %v2470_v41, 6 }
 0x55c   :  { %v1678_v5 = vmul.f32 %v1676_v42, %v3119_v23 }
 0x55e   :  { %v1680_v44 = vrot.slane %v1678_v5, 2  ;;  %v1690_v17 = vrot.slane %v1678_v5, %v1689_v28 }
 0x560   :  { %v1682_v11 = vmul.f32 %v1680_v44, %v1594_v25  ;;  %v1691_v29 = vmul.f32 %v1690_v17, %v1357_v61  ;;  %v1692_v34 = vmul.f32 %v1690_v17, %v3358_v59  ;;  %v1693_v37 = vmul.f32 %v1690_v17, %v1359_v55  ;;  %v2473_v59 = vld [vmem:[%s3406_s0 + $0x10] sm:$0xff] }
 0x561   :  { %v1694_v40 = vmul.f32 %v1690_v17, %v1360_v53 }
 0x562   :  { %v1684_v15 = vrot.slane %v1682_v11, 5 }
 0x564   :  { %v1686_v22 = vsub.f32 %v3119_v23, %v1684_v15 }
 0x566   :  { %v1698_v43 = vrot.slane %v1686_v22, %v1697_v24 }
 0x568   :  { %v1699_v47 = vadd.f32 %v1698_v43, %v1691_v29  ;;  %v1700_v51 = vadd.f32 %v1698_v43, %v1692_v34  ;;  %v1701_v54 = vadd.f32 %v1698_v43, %v1693_v37  ;;  %v1702_v57 = vadd.f32 %v1698_v43, %v1694_v40 }
 0x56a   :  { %v1703_v33 = vadd.f32 %v2471_v63, %v1699_v47  ;;  %v1704_v23 = vadd.f32 %v2472_v27, %v1700_v51  ;;  %v1705_v61 = vadd.f32 %v2473_v59, %v1701_v54  ;;  %v1706_v2 = vadd.f32 %v2474_v46, %v1702_v57 }
 0x56c   :  { %v1707_v48 = vmax.f32 %v1703_v33, 0.0  ;;  %v1708_v50 = vmax.f32 %v1704_v23, 0.0  ;;  %v1709_v52 = vmax.f32 %v1705_v61, 0.0  ;;  %v1710_v53 = vmax.f32 %v1706_v2, 0.0 }
 0x56e   :  { %1711 = vst [vmem:[%s3409_s4] sm:$0xff] %v1707_v48  ;;  %1712 = vst [vmem:[%s3409_s4 + $0x8] sm:$0xff] %v1708_v50 }
 0x56f   :  { %1713 = vst [vmem:[%s3409_s4 + $0x10] sm:$0xff] %v1709_v52  ;;  %1714 = vst [vmem:[%s3409_s4 + $0x18] sm:$0xff] %v1710_v53 }

</bundles_post_ra>
